<compile_context>
chip_gen: v6e
topology: v6e:2x2x1
jax: 0.10.0
libtpu: 0.0.40
codegen_flags: <defaults>
</compile_context>

<pallas_src>
import functools

import jax
import jax.numpy as jnp
from jax import lax
from jax.experimental import pallas as pl
from jax.experimental.pallas import tpu as pltpu


def _round_up(a, m):
    return (a + m - 1) // m * m


_VMEM_LIMIT_BYTES = 48 * 1024 * 1024   # < v7x's 64 MiB physical; > v5e/v6e scoped defaults
_VMEM_TILE_BUDGET = 40 * 1024 * 1024   # per-step live estimate used to size TN


def _io_b_kernel(x_ref, xi_ref, adj_ref,
                 wn2e_x_ref, wn2e_e_ref, bn2e_ref,
                 we2e_ref, be2e_ref,
                 we2n_ref, be2n_ref,
                 wn2n_ref, bn2n_ref,
                 wout_x_ref, wout_h_ref, bout_ref,
                 out_ref, s_acc, *, precision):
    f32 = jnp.float32
    k = pl.program_id(1)

    @pl.when(k == 0)
    def _init():
        s_acc[...] = jnp.zeros_like(s_acc)

    TB, TN, dim = x_ref.shape
    hid = s_acc.shape[-1]
    wdt = we2e_ref.dtype
    xi = xi_ref[...]                                        # (TB, dim): x[:, i, :]

    # ---- edge MLP: relu(n2e(cat(x_n, x_i))) -> relu(e2e(.)) --------------------
    # cat(x_n, x_i) @ W_n2e^T == x_n @ W_n2e[:, :dim]^T + x_i @ W_n2e[:, dim:]^T
    # Per-batch x_i part with the n2e bias folded in (one (TB, hid) add instead
    # of a (TB*TN, hid) broadcast add per node-tile step).
    t = jnp.dot(xi, wn2e_e_ref[...], preferred_element_type=f32,
                precision=precision) + bn2e_ref[...]        # (TB, hid) f32

    # Per-node part.  The reshapes below only merge/split leading dims on
    # sublane-tile boundaries (TN % 16 == 0, minor dim untouched), so they are
    # layout-preserving (no VMEM relayout copies).
    x2 = x_ref[...].reshape(TB * TN, dim)
    h = jnp.dot(x2, wn2e_x_ref[...], preferred_element_type=f32,
                precision=precision)                        # (TB*TN, hid) f32
    h = jnp.maximum(h.reshape(TB, TN, hid) + t[:, None, :], 0.0)

    h = jnp.dot(h.astype(wdt).reshape(TB * TN, hid), we2e_ref[...],
                preferred_element_type=f32, precision=precision)
    h = jnp.maximum(h + be2e_ref[...], 0.0).reshape(TB, TN, hid)   # f32

    # ---- adjacency-weighted node reduction (VPU multiply + sublane reduce) -----
    adj = adj_ref[...]                                      # (TN, 1) f32 column
    s_acc[...] += jnp.sum(h * adj[None, :, :], axis=1)      # (TB, hid) f32

    # ---- node MLP + output head + log-softmax (once per batch tile) ------------
    @pl.when(k == pl.num_programs(1) - 1)
    def _finalize():
        s = s_acc[...]
        g = jnp.maximum(jnp.dot(s.astype(wdt), we2n_ref[...],
                                preferred_element_type=f32,
                                precision=precision) + be2n_ref[...], 0.0)
        g = jnp.maximum(jnp.dot(g.astype(wdt), wn2n_ref[...],
                                preferred_element_type=f32,
                                precision=precision) + bn2n_ref[...], 0.0)
        logits = (jnp.dot(xi, wout_x_ref[...], preferred_element_type=f32,
                          precision=precision)
                  + jnp.dot(g.astype(wdt), wout_h_ref[...],
                            preferred_element_type=f32, precision=precision)
                  + bout_ref[...])                          # (TB, dim) f32
        m = jnp.max(logits, axis=-1, keepdims=True)
        z = logits - m
        lse = jnp.log(jnp.sum(jnp.exp(z), axis=-1, keepdims=True))
        out_ref[...] = (z - lse).astype(out_ref.dtype)


def prepare_params(params, dim, mxu_dtype=jnp.bfloat16):
    """Hoisted out of the forward path: transpose / split / cast weights once."""
    hid = params["b_n2e"].shape[0]
    w_n2e = params["w_n2e"]                       # [hid, 2*dim]
    w_out = params["w_out"]                       # [dim, dim+hid]
    return dict(
        w_n2e_x=jnp.asarray(w_n2e[:, :dim].T, mxu_dtype),   # [dim, hid]
        w_n2e_e=jnp.asarray(w_n2e[:, dim:].T, mxu_dtype),   # [dim, hid]
        w_e2e=jnp.asarray(params["w_e2e"].T, mxu_dtype),    # [hid, hid]
        w_e2n=jnp.asarray(params["w_e2n"].T, mxu_dtype),
        w_n2n=jnp.asarray(params["w_n2n"].T, mxu_dtype),
        w_out_x=jnp.asarray(w_out[:, :dim].T, mxu_dtype),   # [dim, dim]
        w_out_h=jnp.asarray(w_out[:, dim:].T, mxu_dtype),   # [hid, dim]
        b_n2e=params["b_n2e"].reshape(1, hid).astype(jnp.float32),
        b_e2e=params["b_e2e"].reshape(1, hid).astype(jnp.float32),
        b_e2n=params["b_e2n"].reshape(1, hid).astype(jnp.float32),
        b_n2n=params["b_n2n"].reshape(1, hid).astype(jnp.float32),
        b_out=params["b_out"].reshape(1, dim).astype(jnp.float32),
    )


def _pick_tiles(B, N, dim, hid, tb_req, tn_req, mxu_bytes):
    """Choose (tb, b_pad, tn, n_pad) under a VMEM budget, keeping >=2 batch tiles
    when possible so v7x's two TensorCores both get work on the parallel axis."""
    tb = max(8, min((tb_req // 8) * 8, _round_up(B, 8)))
    b_pad = _round_up(B, tb)
    if b_pad // tb == 1 and tb >= 16:
        tb = max(8, _round_up(tb // 2, 8))
        b_pad = _round_up(B, tb)

    def step_bytes(tn):
        return (2 * tb * tn * dim * mxu_bytes                       # dbl-buffered x
                + 2 * tn * 4                                        # dbl-buffered adj
                + 3 * tb * tn * hid * 4                             # live f32 h
                + 2 * (2 * dim * hid + 3 * hid * hid + dim * dim
                       + hid * dim) * mxu_bytes                     # weights
                + tb * hid * 4)                                     # s accumulator

    tn_req = min(tn_req, _round_up(N, 16))
    if tn_req >= N and step_bytes(_round_up(N, 16)) <= _VMEM_TILE_BUDGET:
        tn = _round_up(N, 16)                 # single node tile
    else:
        tn = max(128, min((tn_req // 128) * 128, _round_up(N, 128)))
        while tn > 128 and step_bytes(tn) > _VMEM_TILE_BUDGET:
            tn -= 128
    n_pad = _round_up(N, tn)
    return tb, b_pad, tn, n_pad


def io_b_discrete_forward(prep, x, adj_col, i, num, node_size, *, tb=128, tn=512):
    """Pallas forward. num/node_size only control PyTorch's chunking of the node
    loop; the chunked sum is mathematically identical to one tiled reduction."""
    del num, node_size
    B, N, dim = x.shape
    hid = prep["b_n2e"].shape[-1]
    mxu_dtype = prep["w_n2e_x"].dtype
    mxu_bytes = jnp.dtype(mxu_dtype).itemsize
    # Pin full-precision matmuls for the f32 validation configuration; bf16
    # operands already accumulate in f32 via preferred_element_type.
    precision = lax.Precision.HIGHEST if mxu_dtype == jnp.float32 else None

    tb, b_pad, tn, n_pad = _pick_tiles(B, N, dim, hid, tb, tn, mxu_bytes)
    k_tiles = n_pad // tn

    # Padding is harmless: padded adj entries are 0 so padded nodes contribute
    # nothing to the reduction; padded batch rows are sliced away at the end.
    xp = jnp.pad(x.astype(mxu_dtype), ((0, b_pad - B), (0, n_pad - N), (0, 0)))
    adjp = jnp.pad(adj_col.astype(jnp.float32), (0, n_pad - N)).reshape(n_pad, 1)
    xi = xp[:, i, :]                                     # (b_pad, dim)

    const = lambda shp: pl.BlockSpec(shp, lambda b, k, _s=shp: (0,) * len(_s))
    kernel = functools.partial(_io_b_kernel, precision=precision)

    out = pl.pallas_call(
        kernel,
        out_shape=jax.ShapeDtypeStruct((b_pad, dim), jnp.float32),
        grid_spec=pltpu.PrefetchScalarGridSpec(
            num_scalar_prefetch=0,
            grid=(b_pad // tb, k_tiles),                 # (batch tiles, node tiles)
            in_specs=[
                pl.BlockSpec((tb, tn, dim), lambda b, k: (b, k, 0)),   # x tile
                pl.BlockSpec((tb, dim), lambda b, k: (b, 0)),          # x[:, i, :]
                pl.BlockSpec((tn, 1), lambda b, k: (k, 0)),            # adj column
                const((dim, hid)), const((dim, hid)), const((1, hid)), # n2e
                const((hid, hid)), const((1, hid)),                    # e2e
                const((hid, hid)), const((1, hid)),                    # e2n
                const((hid, hid)), const((1, hid)),                    # n2n
                const((dim, dim)), const((hid, dim)), const((1, dim)), # output head
            ],
            out_specs=pl.BlockSpec((tb, dim), lambda b, k: (b, 0)),
            scratch_shapes=[pltpu.VMEM((tb, hid), jnp.float32)],       # s accumulator
        ),
        compiler_params=pltpu.CompilerParams(
            # batch tiles are independent -> megacore-shardable on v7x;
            # node axis carries the accumulator -> arbitrary.
            dimension_semantics=("parallel", "arbitrary"),
            vmem_limit_bytes=_VMEM_LIMIT_BYTES),
    )(xp, xi, adjp,
      prep["w_n2e_x"], prep["w_n2e_e"], prep["b_n2e"],
      prep["w_e2e"], prep["b_e2e"],
      prep["w_e2n"], prep["b_e2n"],
      prep["w_n2n"], prep["b_n2n"],
      prep["w_out_x"], prep["w_out_h"], prep["b_out"])
    return out[:B]


def init_params(key, dim, hid):
    """Deterministic init matching the nn.Linear shapes (U(-1/sqrt(fan_in), +) like PyTorch)."""
    def linear(k, out_f, in_f):
        kw, kb = jax.random.split(k)
        bound = 1.0 / jnp.sqrt(in_f)
        w = jax.random.uniform(kw, (out_f, in_f), jnp.float32, -bound, bound)
        b = jax.random.uniform(kb, (out_f,), jnp.float32, -bound, bound)
        return w, b

    k1, k2, k3, k4, k5 = jax.random.split(key, 5)
    w_n2e, b_n2e = linear(k1, hid, 2 * dim)
    w_e2e, b_e2e = linear(k2, hid, hid)
    w_e2n, b_e2n = linear(k3, hid, hid)
    w_n2n, b_n2n = linear(k4, hid, hid)
    w_out, b_out = linear(k5, dim, dim + hid)
    return dict(w_n2e=w_n2e, b_n2e=b_n2e, w_e2e=w_e2e, b_e2e=b_e2e,
                w_e2n=w_e2n, b_e2n=b_e2n, w_n2n=w_n2n, b_n2n=b_n2n,
                w_out=w_out, b_out=b_out)


def reference_forward(params, x, adj_col, i, num, node_size):
    """Pure-JAX transcription of the PyTorch forward (including the chunked loop)."""
    starter = x[:, i, :]
    N = x.shape[1]
    total = 0.0
    for n in range(num + 1):
        lo = n * node_size
        hi = (n + 1) * node_size if n != num else N
        cx = x[:, lo:hi, :]
        ca = adj_col[lo:hi]
        ender = jnp.broadcast_to(x[:, i, :][:, None, :], cx.shape)
        c = jnp.concatenate([cx, ender], axis=2)
        c = jax.nn.relu(c @ params["w_n2e"].T + params["b_n2e"])
        c = jax.nn.relu(c @ params["w_e2e"].T + params["b_e2e"])
        c = c * ca[:, None]
        total = total + jnp.sum(c, axis=1)
    h = jax.nn.relu(total @ params["w_e2n"].T + params["b_e2n"])
    h = jax.nn.relu(h @ params["w_n2n"].T + params["b_n2n"])
    h = jnp.concatenate([starter, h], axis=-1)
    ex = h @ params["w_out"].T + params["b_out"]
    return jax.nn.log_softmax(ex, axis=1)


if __name__ == "__main__":
    B, N, dim, hid = 2, 16, 4, 32
    i, node_size = 3, 5
    num = N // node_size  # chunks: [0:5], [5:10], [10:15], remainder [15:16]

    key = jax.random.PRNGKey(0)
    kp, kx, ka = jax.random.split(key, 3)
    params = init_params(kp, dim, hid)
    x = jax.random.normal(kx, (B, N, dim), jnp.float32)
    adj_col = jax.random.uniform(ka, (N,), jnp.float32)

    # Full-precision reference (avoids flakiness from XLA's default bf16-pass
    # f32 matmuls when comparing against the precision-pinned f32 kernel).
    with jax.default_matmul_precision("highest"):
        ref = jax.block_until_ready(
            reference_forward(params, x, adj_col, i, num, node_size))

    # f32 MXU operands + Precision.HIGHEST: tight check against the reference.
    prep_f32 = prepare_params(params, dim, mxu_dtype=jnp.float32)
    out_f32 = jax.block_until_ready(
        io_b_discrete_forward(prep_f32, x, adj_col, i, num, node_size))
    assert out_f32.shape == (B, dim), out_f32.shape
    assert jnp.allclose(out_f32, ref, atol=1e-4, rtol=1e-4), (out_f32, ref)

    # bf16 MXU operands (performance configuration: halves x DMA bytes, full MXU
    # rate on v5e/v6e/v7x).  Accumulation stays f32, so only bf16 input rounding
    # remains -> loose tolerance vs. the f32 reference.
    prep_bf16 = prepare_params(params, dim, mxu_dtype=jnp.bfloat16)
    out_bf16 = jax.block_until_ready(
        io_b_discrete_forward(prep_bf16, x, adj_col, i, num, node_size))
    assert out_bf16.shape == (B, dim), out_bf16.shape
    assert jnp.allclose(out_bf16, ref, atol=1e-1, rtol=1e-1), (out_bf16, ref)

    print("KERNEL_OK")
</pallas_src>

<mosaic_0001>
module attributes {stable_mosaic.version = 11 : i64} {
  func.func @_io_b_kernel(%arg0: i32, %arg1: i32, %arg2: memref<8x16x4xf32, #tpu.memory_space<vmem>>, %arg3: memref<8x4xf32, #tpu.memory_space<vmem>>, %arg4: memref<16x1xf32, #tpu.memory_space<vmem>>, %arg5: memref<4x32xf32, #tpu.memory_space<vmem>>, %arg6: memref<4x32xf32, #tpu.memory_space<vmem>>, %arg7: memref<1x32xf32, #tpu.memory_space<vmem>>, %arg8: memref<32x32xf32, #tpu.memory_space<vmem>>, %arg9: memref<1x32xf32, #tpu.memory_space<vmem>>, %arg10: memref<32x32xf32, #tpu.memory_space<vmem>>, %arg11: memref<1x32xf32, #tpu.memory_space<vmem>>, %arg12: memref<32x32xf32, #tpu.memory_space<vmem>>, %arg13: memref<1x32xf32, #tpu.memory_space<vmem>>, %arg14: memref<4x4xf32, #tpu.memory_space<vmem>>, %arg15: memref<32x4xf32, #tpu.memory_space<vmem>>, %arg16: memref<1x4xf32, #tpu.memory_space<vmem>>, %arg17: memref<8x4xf32, #tpu.memory_space<vmem>>, %arg18: memref<8x32xf32, #tpu.memory_space<vmem>>) attributes {dimension_semantics = [#tpu.dimension_semantics<parallel>, #tpu.dimension_semantics<arbitrary>], iteration_bounds = array<i64: 1, 1>, scalar_prefetch = 0 : i64, scratch_operands = 1 : i64, tpu.core_type = #tpu.core_type<tc>, window_params = [{transform_indices = @transform_0, window_bounds = array<i64: 8, 16, 4>}, {transform_indices = @transform_1, window_bounds = array<i64: 8, 4>}, {transform_indices = @transform_2, window_bounds = array<i64: 16, 1>}, {pipeline_mode = #tpu.pipeline_mode<synchronous>, transform_indices = @transform_3, window_bounds = array<i64: 4, 32>}, {pipeline_mode = #tpu.pipeline_mode<synchronous>, transform_indices = @transform_4, window_bounds = array<i64: 4, 32>}, {pipeline_mode = #tpu.pipeline_mode<synchronous>, transform_indices = @transform_5, window_bounds = array<i64: 1, 32>}, {pipeline_mode = #tpu.pipeline_mode<synchronous>, transform_indices = @transform_6, window_bounds = array<i64: 32, 32>}, {pipeline_mode = #tpu.pipeline_mode<synchronous>, transform_indices = @transform_7, window_bounds = array<i64: 1, 32>}, {pipeline_mode = #tpu.pipeline_mode<synchronous>, transform_indices = @transform_8, window_bounds = array<i64: 32, 32>}, {pipeline_mode = #tpu.pipeline_mode<synchronous>, transform_indices = @transform_9, window_bounds = array<i64: 1, 32>}, {pipeline_mode = #tpu.pipeline_mode<synchronous>, transform_indices = @transform_10, window_bounds = array<i64: 32, 32>}, {pipeline_mode = #tpu.pipeline_mode<synchronous>, transform_indices = @transform_11, window_bounds = array<i64: 1, 32>}, {pipeline_mode = #tpu.pipeline_mode<synchronous>, transform_indices = @transform_12, window_bounds = array<i64: 4, 4>}, {pipeline_mode = #tpu.pipeline_mode<synchronous>, transform_indices = @transform_13, window_bounds = array<i64: 32, 4>}, {pipeline_mode = #tpu.pipeline_mode<synchronous>, transform_indices = @transform_14, window_bounds = array<i64: 1, 4>}, {transform_indices = @transform_15, window_bounds = array<i64: 8, 4>}]} {
    %c0_i32 = arith.constant 0 : i32
    %0 = arith.cmpi eq, %arg1, %c0_i32 : i32
    %1 = arith.extui %0 : i1 to i32
    %c0_i32_0 = arith.constant 0 : i32
    %2 = arith.cmpi ne, %1, %c0_i32_0 : i32
    scf.if %2 {
      %cst_28 = arith.constant 0.000000e+00 : f32
      %39 = vector.broadcast %cst_28 : f32 to vector<8x32xf32>
      %c0_29 = arith.constant 0 : index
      %c0_30 = arith.constant 0 : index
      %40 = vector.load %arg18[%c0_29, %c0_30] : memref<8x32xf32, #tpu.memory_space<vmem>>, vector<8x32xf32>
      tpu.vector_store %arg18[%c0_29, %c0_30], %39 {strides = array<i32>} : memref<8x32xf32, #tpu.memory_space<vmem>>, vector<8x32xf32>,
    } else {
    }
    %c0 = arith.constant 0 : index
    %c0_1 = arith.constant 0 : index
    %3 = vector.load %arg3[%c0, %c0_1] : memref<8x4xf32, #tpu.memory_space<vmem>>, vector<8x4xf32>
    %c0_2 = arith.constant 0 : index
    %c0_3 = arith.constant 0 : index
    %4 = vector.load %arg6[%c0_2, %c0_3] : memref<4x32xf32, #tpu.memory_space<vmem>>, vector<4x32xf32>
    %cst = arith.constant dense<0.000000e+00> : vector<8x32xf32>
    %5 = tpu.matmul %3, %4, %cst {dimension_numbers = #tpu.dot_dimension_numbers<[1], [0], [0], [1], [0, 0, 1, 1], [], []>, precision = #tpu.contract_precision<fp32>} : vector<8x4xf32>, vector<4x32xf32>, vector<8x32xf32> -> vector<8x32xf32>
    %c0_4 = arith.constant 0 : index
    %c0_5 = arith.constant 0 : index
    %6 = vector.load %arg7[%c0_4, %c0_5] : memref<1x32xf32, #tpu.memory_space<vmem>>, vector<1x32xf32>
    %7 = vector.broadcast %6 : vector<1x32xf32> to vector<8x32xf32>
    %8 = arith.addf %5, %7 : vector<8x32xf32>
    %c0_6 = arith.constant 0 : index
    %c0_7 = arith.constant 0 : index
    %c0_8 = arith.constant 0 : index
    %9 = vector.load %arg2[%c0_6, %c0_7, %c0_8] : memref<8x16x4xf32, #tpu.memory_space<vmem>>, vector<8x16x4xf32>
    %10 = vector.shape_cast %9 : vector<8x16x4xf32> to vector<128x4xf32>
    %c0_9 = arith.constant 0 : index
    %c0_10 = arith.constant 0 : index
    %11 = vector.load %arg5[%c0_9, %c0_10] : memref<4x32xf32, #tpu.memory_space<vmem>>, vector<4x32xf32>
    %cst_11 = arith.constant dense<0.000000e+00> : vector<128x32xf32>
    %12 = tpu.matmul %10, %11, %cst_11 {dimension_numbers = #tpu.dot_dimension_numbers<[1], [0], [0], [1], [0, 0, 1, 1], [], []>, precision = #tpu.contract_precision<fp32>} : vector<128x4xf32>, vector<4x32xf32>, vector<128x32xf32> -> vector<128x32xf32>
    %13 = vector.shape_cast %12 : vector<128x32xf32> to vector<8x16x32xf32>
    %14 = vector.shape_cast %8 : vector<8x32xf32> to vector<8x1x32xf32>
    %15 = vector.broadcast %14 : vector<8x1x32xf32> to vector<8x16x32xf32>
    %16 = arith.addf %13, %15 : vector<8x16x32xf32>
    %cst_12 = arith.constant 0.000000e+00 : f32
    %17 = vector.broadcast %cst_12 : f32 to vector<8x16x32xf32>
    %18 = arith.maximumf %16, %17 : vector<8x16x32xf32>
    %19 = vector.shape_cast %18 : vector<8x16x32xf32> to vector<128x32xf32>
    %c0_13 = arith.constant 0 : index
    %c0_14 = arith.constant 0 : index
    %20 = vector.load %arg8[%c0_13, %c0_14] : memref<32x32xf32, #tpu.memory_space<vmem>>, vector<32x32xf32>
    %cst_15 = arith.constant dense<0.000000e+00> : vector<128x32xf32>
    %21 = tpu.matmul %19, %20, %cst_15 {dimension_numbers = #tpu.dot_dimension_numbers<[1], [0], [0], [1], [0, 0, 1, 1], [], []>, precision = #tpu.contract_precision<fp32>} : vector<128x32xf32>, vector<32x32xf32>, vector<128x32xf32> -> vector<128x32xf32>
    %c0_16 = arith.constant 0 : index
    %c0_17 = arith.constant 0 : index
    %22 = vector.load %arg9[%c0_16, %c0_17] : memref<1x32xf32, #tpu.memory_space<vmem>>, vector<1x32xf32>
    %23 = vector.broadcast %22 : vector<1x32xf32> to vector<128x32xf32>
    %24 = arith.addf %21, %23 : vector<128x32xf32>
    %cst_18 = arith.constant 0.000000e+00 : f32
    %25 = vector.broadcast %cst_18 : f32 to vector<128x32xf32>
    %26 = arith.maximumf %24, %25 : vector<128x32xf32>
    %27 = vector.shape_cast %26 : vector<128x32xf32> to vector<8x16x32xf32>
    %c0_19 = arith.constant 0 : index
    %c0_20 = arith.constant 0 : index
    %28 = vector.load %arg4[%c0_19, %c0_20] : memref<16x1xf32, #tpu.memory_space<vmem>>, vector<16x1xf32>
    %c0_21 = arith.constant 0 : index
    %c0_22 = arith.constant 0 : index
    %29 = vector.load %arg18[%c0_21, %c0_22] : memref<8x32xf32, #tpu.memory_space<vmem>>, vector<8x32xf32>
    %30 = vector.shape_cast %28 : vector<16x1xf32> to vector<1x16x1xf32>
    %31 = vector.broadcast %30 : vector<1x16x1xf32> to vector<8x16x32xf32>
    %32 = arith.mulf %27, %31 : vector<8x16x32xf32>
    %cst_23 = arith.constant dense<0.000000e+00> : vector<8x32xf32>
    %33 = vector.multi_reduction <add>, %32, %cst_23 [1] : vector<8x16x32xf32> to vector<8x32xf32>
    %34 = arith.addf %29, %33 : vector<8x32xf32>
    %c0_24 = arith.constant 0 : index
    %c0_25 = arith.constant 0 : index
    %35 = vector.load %arg18[%c0_24, %c0_25] : memref<8x32xf32, #tpu.memory_space<vmem>>, vector<8x32xf32>
    tpu.vector_store %arg18[%c0_24, %c0_25], %34 {strides = array<i32>} : memref<8x32xf32, #tpu.memory_space<vmem>>, vector<8x32xf32>,
    %c0_i32_26 = arith.constant 0 : i32
    %36 = arith.cmpi eq, %arg1, %c0_i32_26 : i32
    %37 = arith.extui %36 : i1 to i32
    %c0_i32_27 = arith.constant 0 : i32
    %38 = arith.cmpi ne, %37, %c0_i32_27 : i32
    scf.if %38 {
      %c0_28 = arith.constant 0 : index
      %c0_29 = arith.constant 0 : index
      %39 = vector.load %arg18[%c0_28, %c0_29] : memref<8x32xf32, #tpu.memory_space<vmem>>, vector<8x32xf32>
      %c0_30 = arith.constant 0 : index
      %c0_31 = arith.constant 0 : index
      %40 = vector.load %arg10[%c0_30, %c0_31] : memref<32x32xf32, #tpu.memory_space<vmem>>, vector<32x32xf32>
      %cst_32 = arith.constant dense<0.000000e+00> : vector<8x32xf32>
      %41 = tpu.matmul %39, %40, %cst_32 {dimension_numbers = #tpu.dot_dimension_numbers<[1], [0], [0], [1], [0, 0, 1, 1], [], []>, precision = #tpu.contract_precision<fp32>} : vector<8x32xf32>, vector<32x32xf32>, vector<8x32xf32> -> vector<8x32xf32>
      %c0_33 = arith.constant 0 : index
      %c0_34 = arith.constant 0 : index
      %42 = vector.load %arg11[%c0_33, %c0_34] : memref<1x32xf32, #tpu.memory_space<vmem>>, vector<1x32xf32>
      %43 = vector.broadcast %42 : vector<1x32xf32> to vector<8x32xf32>
      %44 = arith.addf %41, %43 : vector<8x32xf32>
      %cst_35 = arith.constant 0.000000e+00 : f32
      %45 = vector.broadcast %cst_35 : f32 to vector<8x32xf32>
      %46 = arith.maximumf %44, %45 : vector<8x32xf32>
      %c0_36 = arith.constant 0 : index
      %c0_37 = arith.constant 0 : index
      %47 = vector.load %arg12[%c0_36, %c0_37] : memref<32x32xf32, #tpu.memory_space<vmem>>, vector<32x32xf32>
      %cst_38 = arith.constant dense<0.000000e+00> : vector<8x32xf32>
      %48 = tpu.matmul %46, %47, %cst_38 {dimension_numbers = #tpu.dot_dimension_numbers<[1], [0], [0], [1], [0, 0, 1, 1], [], []>, precision = #tpu.contract_precision<fp32>} : vector<8x32xf32>, vector<32x32xf32>, vector<8x32xf32> -> vector<8x32xf32>
      %c0_39 = arith.constant 0 : index
      %c0_40 = arith.constant 0 : index
      %49 = vector.load %arg13[%c0_39, %c0_40] : memref<1x32xf32, #tpu.memory_space<vmem>>, vector<1x32xf32>
      %50 = vector.broadcast %49 : vector<1x32xf32> to vector<8x32xf32>
      %51 = arith.addf %48, %50 : vector<8x32xf32>
      %cst_41 = arith.constant 0.000000e+00 : f32
      %52 = vector.broadcast %cst_41 : f32 to vector<8x32xf32>
      %53 = arith.maximumf %51, %52 : vector<8x32xf32>
      %c0_42 = arith.constant 0 : index
      %c0_43 = arith.constant 0 : index
      %54 = vector.load %arg14[%c0_42, %c0_43] : memref<4x4xf32, #tpu.memory_space<vmem>>, vector<4x4xf32>
      %cst_44 = arith.constant dense<0.000000e+00> : vector<8x4xf32>
      %55 = tpu.matmul %3, %54, %cst_44 {dimension_numbers = #tpu.dot_dimension_numbers<[1], [0], [0], [1], [0, 0, 1, 1], [], []>, precision = #tpu.contract_precision<fp32>} : vector<8x4xf32>, vector<4x4xf32>, vector<8x4xf32> -> vector<8x4xf32>
      %c0_45 = arith.constant 0 : index
      %c0_46 = arith.constant 0 : index
      %56 = vector.load %arg15[%c0_45, %c0_46] : memref<32x4xf32, #tpu.memory_space<vmem>>, vector<32x4xf32>
      %cst_47 = arith.constant dense<0.000000e+00> : vector<8x4xf32>
      %57 = tpu.matmul %53, %56, %cst_47 {dimension_numbers = #tpu.dot_dimension_numbers<[1], [0], [0], [1], [0, 0, 1, 1], [], []>, precision = #tpu.contract_precision<fp32>} : vector<8x32xf32>, vector<32x4xf32>, vector<8x4xf32> -> vector<8x4xf32>
      %58 = arith.addf %55, %57 : vector<8x4xf32>
      %c0_48 = arith.constant 0 : index
      %c0_49 = arith.constant 0 : index
      %59 = vector.load %arg16[%c0_48, %c0_49] : memref<1x4xf32, #tpu.memory_space<vmem>>, vector<1x4xf32>
      %60 = vector.broadcast %59 : vector<1x4xf32> to vector<8x4xf32>
      %61 = arith.addf %58, %60 : vector<8x4xf32>
      %cst_50 = arith.constant dense<0xFF800000> : vector<8xf32>
      %62 = vector.multi_reduction <maximumf>, %61, %cst_50 [1] : vector<8x4xf32> to vector<8xf32>
      %63 = vector.shape_cast %62 : vector<8xf32> to vector<8x1xf32>
      %64 = vector.broadcast %63 : vector<8x1xf32> to vector<8x4xf32>
      %65 = arith.subf %61, %64 : vector<8x4xf32>
      %66 = math.exp %65 : vector<8x4xf32>
      %cst_51 = arith.constant dense<0.000000e+00> : vector<8xf32>
      %67 = vector.multi_reduction <add>, %66, %cst_51 [1] : vector<8x4xf32> to vector<8xf32>
      %68 = vector.shape_cast %67 : vector<8xf32> to vector<8x1xf32>
      %69 = math.log %68 : vector<8x1xf32>
      %70 = vector.broadcast %69 : vector<8x1xf32> to vector<8x4xf32>
      %71 = arith.subf %65, %70 : vector<8x4xf32>
      %c0_52 = arith.constant 0 : index
      %c0_53 = arith.constant 0 : index
      %72 = vector.load %arg17[%c0_52, %c0_53] : memref<8x4xf32, #tpu.memory_space<vmem>>, vector<8x4xf32>
      tpu.vector_store %arg17[%c0_52, %c0_53], %71 {strides = array<i32>} : memref<8x4xf32, #tpu.memory_space<vmem>>, vector<8x4xf32>,
    } else {
    }
    return
  }
  func.func @transform_0(%arg0: i32, %arg1: i32) -> (i32, i32, i32) {
    %c0_i32 = arith.constant 0 : i32
    %c0_i32_0 = arith.constant 0 : i32
    return %arg0, %arg1, %c0_i32 : i32, i32, i32
  }
  func.func @transform_1(%arg0: i32, %arg1: i32) -> (i32, i32) {
    %c0_i32 = arith.constant 0 : i32
    %c0_i32_0 = arith.constant 0 : i32
    return %arg0, %c0_i32 : i32, i32
  }
  func.func @transform_2(%arg0: i32, %arg1: i32) -> (i32, i32) {
    %c0_i32 = arith.constant 0 : i32
    %c0_i32_0 = arith.constant 0 : i32
    return %arg1, %c0_i32 : i32, i32
  }
  func.func @transform_3(%arg0: i32, %arg1: i32) -> (i32, i32) {
    %c0_i32 = arith.constant 0 : i32
    %c0_i32_0 = arith.constant 0 : i32
    %c0_i32_1 = arith.constant 0 : i32
    return %c0_i32, %c0_i32_0 : i32, i32
  }
  func.func @transform_4(%arg0: i32, %arg1: i32) -> (i32, i32) {
    %c0_i32 = arith.constant 0 : i32
    %c0_i32_0 = arith.constant 0 : i32
    %c0_i32_1 = arith.constant 0 : i32
    return %c0_i32, %c0_i32_0 : i32, i32
  }
  func.func @transform_5(%arg0: i32, %arg1: i32) -> (i32, i32) {
    %c0_i32 = arith.constant 0 : i32
    %c0_i32_0 = arith.constant 0 : i32
    %c0_i32_1 = arith.constant 0 : i32
    return %c0_i32, %c0_i32_0 : i32, i32
  }
  func.func @transform_6(%arg0: i32, %arg1: i32) -> (i32, i32) {
    %c0_i32 = arith.constant 0 : i32
    %c0_i32_0 = arith.constant 0 : i32
    %c0_i32_1 = arith.constant 0 : i32
    return %c0_i32, %c0_i32_0 : i32, i32
  }
  func.func @transform_7(%arg0: i32, %arg1: i32) -> (i32, i32) {
    %c0_i32 = arith.constant 0 : i32
    %c0_i32_0 = arith.constant 0 : i32
    %c0_i32_1 = arith.constant 0 : i32
    return %c0_i32, %c0_i32_0 : i32, i32
  }
  func.func @transform_8(%arg0: i32, %arg1: i32) -> (i32, i32) {
    %c0_i32 = arith.constant 0 : i32
    %c0_i32_0 = arith.constant 0 : i32
    %c0_i32_1 = arith.constant 0 : i32
    return %c0_i32, %c0_i32_0 : i32, i32
  }
  func.func @transform_9(%arg0: i32, %arg1: i32) -> (i32, i32) {
    %c0_i32 = arith.constant 0 : i32
    %c0_i32_0 = arith.constant 0 : i32
    %c0_i32_1 = arith.constant 0 : i32
    return %c0_i32, %c0_i32_0 : i32, i32
  }
  func.func @transform_10(%arg0: i32, %arg1: i32) -> (i32, i32) {
    %c0_i32 = arith.constant 0 : i32
    %c0_i32_0 = arith.constant 0 : i32
    %c0_i32_1 = arith.constant 0 : i32
    return %c0_i32, %c0_i32_0 : i32, i32
  }
  func.func @transform_11(%arg0: i32, %arg1: i32) -> (i32, i32) {
    %c0_i32 = arith.constant 0 : i32
    %c0_i32_0 = arith.constant 0 : i32
    %c0_i32_1 = arith.constant 0 : i32
    return %c0_i32, %c0_i32_0 : i32, i32
  }
  func.func @transform_12(%arg0: i32, %arg1: i32) -> (i32, i32) {
    %c0_i32 = arith.constant 0 : i32
    %c0_i32_0 = arith.constant 0 : i32
    %c0_i32_1 = arith.constant 0 : i32
    return %c0_i32, %c0_i32_0 : i32, i32
  }
  func.func @transform_13(%arg0: i32, %arg1: i32) -> (i32, i32) {
    %c0_i32 = arith.constant 0 : i32
    %c0_i32_0 = arith.constant 0 : i32
    %c0_i32_1 = arith.constant 0 : i32
    return %c0_i32, %c0_i32_0 : i32, i32
  }
  func.func @transform_14(%arg0: i32, %arg1: i32) -> (i32, i32) {
    %c0_i32 = arith.constant 0 : i32
    %c0_i32_0 = arith.constant 0 : i32
    %c0_i32_1 = arith.constant 0 : i32
    return %c0_i32, %c0_i32_0 : i32, i32
  }
  func.func @transform_15(%arg0: i32, %arg1: i32) -> (i32, i32) {
    %c0_i32 = arith.constant 0 : i32
    %c0_i32_0 = arith.constant 0 : i32
    return %arg0, %c0_i32 : i32, i32
  }
}

</mosaic_0001>

<bundles_post_ra>
// kernel: tpu_custom_call.1
= control target key start
LH: loop header
LB: loop body
LE: loop exit
PB: predicated region body
PF: predicated region fallthrough
CT: control target
= control target key end

     0   :  { %vm69_vm0 = vcmask 1043456   ;;  %vm65_vm1 = vcmask 31744   ;;  %v7663_v0 = vmov 0.0   ;;  %vm6060_vm2 = vmmov 0   ;;  %s7647_s3 = inlined_call_operand.vmem [shape: f32[4,32], index: 3, kind: input, shape index: {}]   ;;  %s7648_s4 = inlined_call_operand.vmem [shape: f32[4,32], index: 4, kind: input, shape index: {}]   ;;  %s7649_s1 = inlined_call_operand.vmem [shape: f32[8,4], index: 1, kind: input, shape index: {}]   ;;  %s7650_s0 = inlined_call_operand.vmem [shape: f32[8,16,4], index: 0, kind: input, shape index: {}]   ;;  %s7651_s6 = inlined_call_operand.vmem [shape: f32[32,32], index: 6, kind: input, shape index: {}]   ;;  %s7652_s5 = inlined_call_operand.vmem [shape: f32[1,32], index: 5, kind: input, shape index: {}]   ;;  %s7653_s2 = inlined_call_operand.vmem [shape: f32[16,1], index: 2, kind: input, shape index: {}]   ;;  %s7654_s8 = inlined_call_operand.vmem [shape: f32[32,32], index: 8, kind: input, shape index: {}]   ;;  %s7655_s7 = inlined_call_operand.vmem [shape: f32[1,32], index: 7, kind: input, shape index: {}]   ;;  %s7656_s10 = inlined_call_operand.vmem [shape: f32[32,32], index: 10, kind: input, shape index: {}]   ;;  %s7657_s9 = inlined_call_operand.vmem [shape: f32[1,32], index: 9, kind: input, shape index: {}]   ;;  %s7658_s13 = inlined_call_operand.vmem [shape: f32[32,4], index: 13, kind: input, shape index: {}]   ;;  %s7659_s11 = inlined_call_operand.vmem [shape: f32[1,32], index: 11, kind: input, shape index: {}]   ;;  %s7660_s12 = inlined_call_operand.vmem [shape: f32[4,4], index: 12, kind: input, shape index: {}]   ;;  %s7661_s14 = inlined_call_operand.vmem [shape: f32[1,4], index: 14, kind: input, shape index: {}]   ;;  %s7662_s15 = inlined_call_operand.vmem [shape: f32[8,4], index: 15, kind: output, shape index: {}]  }
   0x1   :  { %5444 = vmatprep.subr.mxu0 %v7663_v0  ;;  %v57_v1 = vld [vmem:[%s7648_s4] sm:$0xf]  ;;  %5446 = vmatprep.mubr.msk.f32.mxu0 %vm6060_vm2, %v7663_v0  ;;  %v520_v8 = vld [vmem:[%s7650_s0 + $0x8] sm:$0xff]  ;;  %v521_v9 = vld [vmem:[%s7650_s0 + $0x10] sm:$0xff]  ;;  %vm54_vm3 = vcmask 261120   ;;  %vm3115_vm4 = vcmask 1041409  }
   0x2   :  { %v535_v2 = vld [vmem:[%s7647_s3] sm:$0xf]  ;;  %v71_v4 = vsel %vm69_vm0, %v57_v1, 0  ;;  %5449 = vmatprep.subr.mxu1 %v7663_v0  ;;  %5451 = vmatprep.mubr.msk.f32.mxu1 %vm6060_vm2, %v7663_v0  ;;  %v522_v14 = vld [vmem:[%s7650_s0 + $0x18] sm:$0xff]  ;;  %v540_v16 = vsel %vm65_vm1, %v520_v8, 0  ;;  %v543_v17 = vsel %vm65_vm1, %v521_v9, 0 }
   0x3   :  { %v56_v3 = vld [vmem:[%s7649_s1] sm:$0xff]  ;;  %v585_v5 = vsel %vm69_vm0, %v535_v2, 0  ;;  %v6170_v10 = vand.u32 4294901760, %v71_v4  ;;  %v6192_v21 = vand.u32 4294901760, %v540_v16  ;;  %v546_v22 = vsel %vm65_vm1, %v522_v14, 0  ;;  %v524_v35 = vld [vmem:[%s7650_s0 + $0x28] sm:$0xff] }
   0x4   :  { %v67_v6 = vsel %vm65_vm1, %v56_v3, 0  ;;  %v519_v7 = vld [vmem:[%s7650_s0] sm:$0xff]  ;;  %v6172_v11 = vand.u32 4294901760, %v585_v5  ;;  %v6205_v27 = vand.u32 4294901760, %v543_v17  ;;  %v6211_v30 = vand.u32 4294901760, %v546_v22  ;;  %v525_v36 = vld [vmem:[%s7650_s0 + $0x30] sm:$0xff] }
   0x5   :  { %v6174_v12 = vand.u32 4294901760, %v67_v6  ;;  %v537_v13 = vsel %vm65_vm1, %v519_v7, 0  ;;  %v523_v18 = vld [vmem:[%s7650_s0 + $0x20] sm:$0xff]  ;;  %5445 = vmatpush3.msra.mxu0 %v6170_v10  ;;  %v181_v20 = vsub.f32 %v71_v4, %v6170_v10  ;;  %v6209_v29 = vsub.f32 %v540_v16, %v6192_v21  ;;  %v526_v37 = vld [vmem:[%s7650_s0 + $0x38] sm:$0xff]  ;;  %v528_v51 = vld [vmem:[%s7650_s0 + $0x48] sm:$0xff] }
   0x6   :  { %v6180_v15 = vand.u32 4294901760, %v537_v13  ;;  %5454 = vmatprep.subr.mxu0 %v7663_v0  ;;  %v6197_v23 = vsub.f32 %v585_v5, %v6172_v11  ;;  %v549_v28 = vsel %vm65_vm1, %v523_v18, 0  ;;  %v6233_v41 = vsub.f32 %v543_v17, %v6205_v27  ;;  %v527_v44 = vld [vmem:[%s7650_s0 + $0x40] sm:$0xff]  ;;  %v529_v56 = vld [vmem:[%s7650_s0 + $0x50] sm:$0xff]  ;;  %v530_v3 = vld [vmem:[%s7650_s0 + $0x58] sm:$0xff] }
   0x7   :  { %7714 = vst [vmem:[#allocation3_spill] sm:$0xff] %v6174_v12  ;;  %v6189_v19 = vsub.f32 %v67_v6, %v6174_v12  ;;  %v182_v26 = vand.u32 4294901760, %v181_v20  ;;  %v6218_v34 = vand.u32 4294901760, %v549_v28  ;;  %v665_v42 = vand.u32 4294901760, %v6209_v29  ;;  %v531_v14 = vld [vmem:[%s7650_s0 + $0x60] sm:$0xff] }
   0x8   :  { %v6200_v24 = vsub.f32 %v537_v13, %v6180_v15  ;;  %v6216_v33 = vand.u32 4294901760, %v6197_v23  ;;  %v6237_v43 = vsub.f32 %v546_v22, %v6211_v30  ;;  %v552_v45 = vsel %vm65_vm1, %v524_v35, 0 }
   0x9   :  { %7715 = vst [vmem:[#allocation4_spill] sm:$0xff] %v6189_v19  ;;  %v6203_v25 = vand.u32 4294901760, %v6189_v19  ;;  %v183_v32 = vsub.f32 %v181_v20, %v182_v26  ;;  %v555_v46 = vsel %vm65_vm1, %v525_v36, 0  ;;  %v558_v47 = vsel %vm65_vm1, %v526_v37, 0  ;;  %v533_v37 = vld [vmem:[%s7650_s0 + $0x70] sm:$0xff] }
   0xa   :  { %v655_v40 = vand.u32 4294901760, %v6200_v24  ;;  %v847_v48 = vsub.f32 %v6197_v23, %v6216_v33  ;;  %v6250_v49 = vsub.f32 %v549_v28, %v6218_v34  ;;  %v6252_v50 = vand.u32 4294901760, %v552_v45 }
   0xb   :  { %7716 = vst [vmem:[#allocation5_spill] sm:$0xff] %v6203_v25  ;;  %v142_v31 = vsub.f32 %v6189_v19, %v6203_v25  ;;  %v184_v39 = vand.u32 4294901760, %v183_v32  ;;  %v675_v53 = vand.u32 4294901760, %v6233_v41  ;;  %v6264_v54 = vand.u32 4294901760, %v555_v46 }
   0xc   :  { %v656_v52 = vsub.f32 %v6200_v24, %v655_v40  ;;  %v561_v55 = vsel %vm65_vm1, %v527_v44, 0  ;;  %v666_v57 = vsub.f32 %v6209_v29, %v665_v42  ;;  %v685_v58 = vand.u32 4294901760, %v6237_v43 }
   0xd   :  { %v6229_v38 = vand.u32 4294901760, %v142_v31  ;;  %5450 = vmatpush3.msra.mxu1 %v184_v39  ;;  %v6277_v59 = vand.u32 4294901760, %v558_v47  ;;  %v6282_v60 = vsub.f32 %v552_v45, %v6252_v50  ;;  %v6284_v61 = vand.u32 4294901760, %v561_v55  ;;  %v532_v31 = vld [vmem:[%s7650_s0 + $0x68] sm:$0xff] }
   0xe   :  { %5452 = vmatmul.mubr.f32.vlgmr.msra.gmra.mxu1 %v6174_v12  ;;  %5459 = vmatprep.subr.mxu1 %v7663_v0  ;;  %v564_v62 = vsel %vm65_vm1, %v528_v51, 0  ;;  %v695_v63 = vand.u32 4294901760, %v6250_v49  ;;  %v6290_v1 = vsub.f32 %v555_v46, %v6264_v54  ;;  %v567_v2 = vsel %vm65_vm1, %v529_v56, 0  ;;  %v534_v56 = vld [vmem:[%s7650_s0 + $0x78] sm:$0xff] }
   0xf   :  { %7717 = vst [vmem:[#allocation6_spill] sm:$0xff] %v6229_v38  ;;  %5447 = vmatmul.mubr.f32.vlgmr.msra.gmra.mxu0 %v6229_v38  ;;  %5460 = vmatpush3.msra.mxu1 %v6170_v10  ;;  %v848_v4 = vand.u32 4294901760, %v847_v48  ;;  %v657_v5 = vand.u32 4294901760, %v656_v52  ;;  %v676_v6 = vsub.f32 %v6233_v41, %v675_v53  ;;  %v667_v7 = vand.u32 4294901760, %v666_v57 }
  0x10   :  { %5455 = vmatpush3.msra.mxu0 %v181_v20  ;;  %5456 = vmatprep.mubr.msk.f32.mxu0 %vm6060_vm2, %v7663_v0  ;;  %v686_v8 = vsub.f32 %v6237_v43, %v685_v58  ;;  %v6309_v9 = vsub.f32 %v558_v47, %v6277_v59  ;;  %v6311_v13 = vand.u32 4294901760, %v564_v62  ;;  %v6320_v16 = vsub.f32 %v561_v55, %v6284_v61 }
  0x11   :  { %5461 = vmatprep.mubr.msk.f32.mxu1 %vm6060_vm2, %v7663_v0  ;;  %5464 = vmatprep.subr.mxu0 %v7663_v0  ;;  %v6322_v17 = vand.u32 4294901760, %v567_v2  ;;  %v570_v18 = vsel %vm65_vm1, %v530_v3, 0  ;;  %v696_v20 = vsub.f32 %v6250_v49, %v695_v63  ;;  %v715_v22 = vand.u32 4294901760, %v6290_v1 }
  0x12   :  { %5462 = vmatmul.mubr.f32.vlgmr.msra.gmra.mxu1 %v6203_v25  ;;  %5469 = vmatprep.subr.mxu1 %v7663_v0  ;;  %v573_v28 = vsel %vm65_vm1, %v531_v14, 0  ;;  %v725_v32 = vand.u32 4294901760, %v6309_v9  ;;  %v6338_v35 = vsub.f32 %v564_v62, %v6311_v13  ;;  %v6340_v36 = vand.u32 4294901760, %v570_v18 }
  0x13   :  { %5457 = vmatmul.mubr.f32.vlgmr.msra.gmra.mxu0 %v6189_v19  ;;  %5470 = vmatpush3.msra.mxu1 %v6170_v10  ;;  %v705_v10 = vand.u32 4294901760, %v6282_v60  ;;  %v687_v39 = vand.u32 4294901760, %v686_v8  ;;  %v735_v45 = vand.u32 4294901760, %v6320_v16  ;;  %v6351_v46 = vsub.f32 %v567_v2, %v6322_v17 }
  0x14   :  { %5465 = vmatpush3.msra.mxu0 %v182_v26  ;;  %5466 = vmatprep.mubr.msk.f32.mxu0 %vm6060_vm2, %v7663_v0  ;;  %v677_v26 = vand.u32 4294901760, %v676_v6  ;;  %v697_v47 = vand.u32 4294901760, %v696_v20  ;;  %v716_v48 = vsub.f32 %v6290_v1, %v715_v22  ;;  %v6358_v51 = vand.u32 4294901760, %v573_v28 }
  0x15   :  { %5471 = vmatprep.mubr.msk.f32.mxu1 %vm6060_vm2, %v7663_v0  ;;  %5474 = vmatprep.subr.mxu0 %v6172_v11  ;;  %v706_v44 = vsub.f32 %v6282_v60, %v705_v10  ;;  %v576_v52 = vsel %vm65_vm1, %v532_v31, 0  ;;  %v579_v55 = vsel %vm65_vm1, %v533_v37, 0  ;;  %v745_v57 = vand.u32 4294901760, %v6338_v35 }
  0x16   :  { %5472 = vmatmul.mubr.f32.vlgmr.msra.gmra.mxu1 %v6174_v12  ;;  %5500 = vmatprep.subr.mxu1 %v848_v4  ;;  %v6373_v62 = vsub.f32 %v570_v18, %v6340_v36  ;;  %v736_v3 = vsub.f32 %v6320_v16, %v735_v45  ;;  %v717_v6 = vand.u32 4294901760, %v716_v48  ;;  %v6386_v8 = vand.u32 4294901760, %v579_v55 }
  0x17   :  { %5467 = vmatmul.mubr.f32.vlgmr.msra.gmra.mxu0 %v6174_v12  ;;  %5501 = vmatpush3.msra.mxu1 %v848_v4  ;;  %v707_v2 = vand.u32 4294901760, %v706_v44  ;;  %v755_v4 = vand.u32 4294901760, %v6351_v46  ;;  %v582_v14 = vsel %vm65_vm1, %v534_v56, 0  ;;  %v746_v18 = vsub.f32 %v6338_v35, %v745_v57 }
  0x18   :  { %5475 = vmatpush3.msra.mxu0 %v6172_v11  ;;  %5476 = vmatprep.mubr.f32.mxu0 %v657_v5  ;;  %v6379_v5 = vand.u32 4294901760, %v576_v52  ;;  %v737_v37 = vand.u32 4294901760, %v736_v3  ;;  %vm3117_vm5 = vcmask 1042434   ;;  %vm3119_vm6 = vcmask 1043459  }
  0x19   :  { %5502 = vmatprep.mubr.f32.mxu1 %v6180_v15  ;;  %5526 = vmatprep.subr.mxu0 %v6197_v23  ;;  %v747_v48 = vand.u32 4294901760, %v746_v18  ;;  %vm3121_vm7 = vcmask 1044484   ;;  %vm3123_vm8 = vcmask 1045509   ;;  %vm3125_vm9 = vcmask 1046534  }
  0x1a   :  { %5503 = vmatmul.mubr.f32.vlgmr.msra.gmra.mxu1 %v6192_v21  ;;  %5552 = vmatprep.subr.mxu1 %v6172_v11  ;;  %v6396_v31 = vsub.f32 %v576_v52, %v6379_v5  ;;  %vm3127_vm10 = vcmask 1047559  }
  0x1b   :  { %5477 = vmatmul.mubr.f32.vlgmr.msra.gmra.mxu0 %v667_v7  ;;  %5553 = vmatpush3.msra.mxu1 %v6172_v11  ;;  %v6384_v7 = vsub.f32 %v573_v28, %v6358_v51  ;;  %v6398_v28 = vand.u32 4294901760, %v582_v14 }
  0x1c   :  { %5527 = vmatpush3.msra.mxu0 %v6197_v23  ;;  %5479 = vmatprep.mubr.f32.mxu0 %v677_v26  ;;  %v726_v23 = vsub.f32 %v6309_v9, %v725_v32  ;;  %v765_v26 = vand.u32 4294901760, %v6373_v62  ;;  %v785_v56 = vand.u32 4294901760, %v6396_v31 }
  0x1d   :  { %5505 = vmatprep.mubr.f32.mxu1 %v6205_v27  ;;  %5578 = vmatprep.subr.mxu0 %v6216_v33  ;;  %v775_v44 = vand.u32 4294901760, %v6384_v7 }
  0x1e   :  { %5506 = vmatmul.mubr.f32.gmra.mxu1 %v6211_v30  ;;  %5604 = vmatprep.subr.mxu1 %v6172_v11  ;;  %v727_v20 = vand.u32 4294901760, %v726_v23  ;;  %v766_v52 = vsub.f32 %v6373_v62, %v765_v26  ;;  %v6414_v23 = vsub.f32 %v582_v14, %v6398_v28  ;;  %v786_v18 = vsub.f32 %v6396_v31, %v785_v56 }
  0x1f   :  { %5480 = vmatmul.mubr.f32.gmra.mxu0 %v687_v39  ;;  %5508 = vmatprep.mubr.f32.mxu1 %v6218_v34  ;;  %v756_v39 = vsub.f32 %v6351_v46, %v755_v4 }
  0x20   :  { %5482 = vmatprep.mubr.f32.mxu0 %v697_v47  ;;  %v6406_v47 = vsub.f32 %v579_v55, %v6386_v8  ;;  %v776_v55 = vsub.f32 %v6384_v7, %v775_v44 }
  0x22   :  { %5509 = vmatmul.mubr.f32.gmra.mxu1 %v6252_v50  ;;  %v795_v3 = vand.u32 4294901760, %v6406_v47  ;;  %v777_v14 = vand.u32 4294901760, %v776_v55 }
  0x23   :  { %5483 = vmatmul.mubr.f32.gmra.mxu0 %v707_v2  ;;  %5511 = vmatprep.mubr.f32.mxu1 %v6264_v54  ;;  %v757_v2 = vand.u32 4294901760, %v756_v39  ;;  %v787_v39 = vand.u32 4294901760, %v786_v18 }
  0x24   :  { %5485 = vmatprep.mubr.f32.mxu0 %v717_v6  ;;  %v767_v6 = vand.u32 4294901760, %v766_v52 }
  0x26   :  { %5512 = vmatmul.mubr.f32.gmra.mxu1 %v6277_v59 }
  0x27   :  { %5486 = vmatmul.mubr.f32.gmra.mxu0 %v727_v20  ;;  %5514 = vmatprep.mubr.f32.mxu1 %v6284_v61  ;;  %v805_v20 = vand.u32 4294901760, %v6414_v23 }
  0x28   :  { %5488 = vmatprep.mubr.f32.mxu0 %v737_v37  ;;  %v796_v37 = vsub.f32 %v6406_v47, %v795_v3 }
  0x29   :  { %v806_v0 = vsub.f32 %v6414_v23, %v805_v20 }
  0x2a   :  { %5515 = vmatmul.mubr.f32.gmra.mxu1 %v6311_v13 }
  0x2b   :  { %5489 = vmatmul.mubr.f32.gmra.mxu0 %v747_v48  ;;  %5517 = vmatprep.mubr.f32.mxu1 %v6322_v17  ;;  %v797_v48 = vand.u32 4294901760, %v796_v37  ;;  %v807_v52 = vand.u32 4294901760, %v806_v0  ;;  %v1803_v0 = vld [vmem:[%s7651_s6 + $0x18] sm:$0xff] }
  0x2c   :  { %5491 = vmatprep.mubr.f32.mxu0 %v757_v2 }
  0x2e   :  { %5518 = vmatmul.mubr.f32.gmra.mxu1 %v6340_v36 }
  0x2f   :  { %5492 = vmatmul.mubr.f32.gmra.mxu0 %v767_v6  ;;  %5520 = vmatprep.mubr.f32.mxu1 %v6358_v51 }
  0x30   :  { %5494 = vmatprep.mubr.f32.mxu0 %v777_v14 }
  0x32   :  { %5521 = vmatmul.mubr.f32.gmra.mxu1 %v6379_v5 }
  0x33   :  { %5495 = vmatmul.mubr.f32.gmra.mxu0 %v787_v39  ;;  %5523 = vmatprep.mubr.f32.mxu1 %v6386_v8 }
  0x34   :  { %5497 = vmatprep.mubr.f32.mxu0 %v797_v48 }
  0x36   :  { %5524 = vmatmul.mubr.f32.gmra.mxu1 %v6398_v28 }
  0x37   :  { %5498 = vmatmul.mubr.f32.gmra.mxu0 %v807_v52  ;;  %5554 = vmatprep.mubr.f32.mxu1 %v655_v40  ;;  %v7724_v40 = vmov 0.0  }
  0x38   :  { %5528 = vmatprep.mubr.f32.mxu0 %v6200_v24  ;;  %55 = vst.msk [vmem:[#allocation2] sm:$0xff] %vm54_vm3, %v7724_v40 }
  0x3a   :  { %5555 = vmatmul.mubr.f32.vlgmr.msra.gmra.mxu1 %v665_v42 }
  0x3b   :  { %5529 = vmatmul.mubr.f32.vlgmr.msra.gmra.mxu0 %v6209_v29  ;;  %5605 = vmatpush3.msra.mxu1 %v6172_v11  ;;  %v6512_v11 = vand.u32 4294901760, %v1803_v0  ;;  %v1801_v29 = vld [vmem:[%s7651_s6 + $0x8] sm:$0xff] }
  0x3c   :  { %5579 = vmatpush3.msra.mxu0 %v6216_v33  ;;  %5531 = vmatprep.mubr.f32.mxu0 %v6233_v41 }
  0x3d   :  { %5557 = vmatprep.mubr.f32.mxu1 %v675_v53  ;;  %7718 = vst [vmem:[#allocation7_spill] sm:$0xff] %v6512_v11  ;;  %5630 = vmatprep.subr.mxu0 %v6512_v11 }
  0x3e   :  { %5558 = vmatmul.mubr.f32.gmra.mxu1 %v685_v58 }
  0x3f   :  { %5532 = vmatmul.mubr.f32.gmra.mxu0 %v6237_v43  ;;  %5560 = vmatprep.mubr.f32.mxu1 %v695_v63  ;;  %v1800_v43 = vld [vmem:[%s7651_s6] sm:$0xff] }
  0x40   :  { %5534 = vmatprep.mubr.f32.mxu0 %v6250_v49 }
  0x42   :  { %5561 = vmatmul.mubr.f32.gmra.mxu1 %v705_v10 }
  0x43   :  { %5535 = vmatmul.mubr.f32.gmra.mxu0 %v6282_v60  ;;  %5563 = vmatprep.mubr.f32.mxu1 %v715_v22 }
  0x44   :  { %5537 = vmatprep.mubr.f32.mxu0 %v6290_v1 }
  0x46   :  { %5564 = vmatmul.mubr.f32.gmra.mxu1 %v725_v32 }
  0x47   :  { %5538 = vmatmul.mubr.f32.gmra.mxu0 %v6309_v9  ;;  %5566 = vmatprep.mubr.f32.mxu1 %v735_v45 }
  0x48   :  { %5540 = vmatprep.mubr.f32.mxu0 %v6320_v16 }
  0x4a   :  { %5567 = vmatmul.mubr.f32.gmra.mxu1 %v745_v57 }
  0x4b   :  { %5541 = vmatmul.mubr.f32.gmra.mxu0 %v6338_v35  ;;  %5569 = vmatprep.mubr.f32.mxu1 %v755_v4 }
  0x4c   :  { %5543 = vmatprep.mubr.f32.mxu0 %v6351_v46 }
  0x4e   :  { %5570 = vmatmul.mubr.f32.gmra.mxu1 %v765_v26 }
  0x4f   :  { %5544 = vmatmul.mubr.f32.gmra.mxu0 %v6373_v62  ;;  %5572 = vmatprep.mubr.f32.mxu1 %v775_v44 }
  0x50   :  { %5546 = vmatprep.mubr.f32.mxu0 %v6384_v7 }
  0x52   :  { %5573 = vmatmul.mubr.f32.gmra.mxu1 %v785_v56 }
  0x53   :  { %5547 = vmatmul.mubr.f32.gmra.mxu0 %v6396_v31  ;;  %5575 = vmatprep.mubr.f32.mxu1 %v795_v3 }
  0x54   :  { %5549 = vmatprep.mubr.f32.mxu0 %v6406_v47 }
  0x56   :  { %5576 = vmatmul.mubr.f32.gmra.mxu1 %v805_v20 }
  0x57   :  { %5550 = vmatmul.mubr.f32.gmra.mxu0 %v6414_v23  ;;  %5606 = vmatprep.mubr.f32.mxu1 %v6180_v15 }
  0x58   :  { %5580 = vmatprep.mubr.f32.mxu0 %v6180_v15  ;;  %v6516_v15 = vsub.f32 %v1803_v0, %v6512_v11 }
  0x5a   :  { %5607 = vmatmul.mubr.f32.vlgmr.msra.gmra.mxu1 %v6192_v21  ;;  %7719 = vst [vmem:[#allocation8_spill] sm:$0xff] %v6516_v15  ;;  %v6523_v24 = vand.u32 4294901760, %v6516_v15 }
  0x5b   :  { %5581 = vmatmul.mubr.f32.vlgmr.msra.gmra.mxu0 %v6192_v21  ;;  %5609 = vmatprep.mubr.f32.mxu1 %v6205_v27  ;;  %v1802_v21 = vld [vmem:[%s7651_s6 + $0x10] sm:$0xff] }
  0x5c   :  { %5583 = vmatprep.mubr.f32.mxu0 %v6205_v27  ;;  %5631 = vmatpush3.msra.mxu0 %v6512_v11  ;;  %7720 = vst [vmem:[#allocation9_spill] sm:$0xff] %v6523_v24  ;;  %v6525_v27 = vand.u32 4294901760, %v1802_v21 }
  0x5e   :  { %5610 = vmatmul.mubr.f32.gmra.mxu1 %v6211_v30  ;;  %7721 = vst [vmem:[#allocation10_spill] sm:$0xff] %v6525_v27  ;;  %5632 = vmatprep.subr.mxu0 %v6525_v27  ;;  %v6534_v33 = vsub.f32 %v1802_v21, %v6525_v27 }
  0x5f   :  { %5584 = vmatmul.mubr.f32.gmra.mxu0 %v6211_v30  ;;  %5612 = vmatprep.mubr.f32.mxu1 %v6218_v34  ;;  %v2117_v30 = vsub.f32 %v6516_v15, %v6523_v24 }
  0x60   :  { %5586 = vmatprep.mubr.f32.mxu0 %v6218_v34  ;;  %7722 = vst [vmem:[#allocation11_spill] sm:$0xff] %v6534_v33  ;;  %v6536_v34 = vand.u32 4294901760, %v1801_v29  ;;  %5633 = vmatpush3.msra.mxu0 %v6525_v27  ;;  %v6542_v42 = vand.u32 4294901760, %v6534_v33 }
  0x61   :  { %v2118_v41 = vand.u32 4294901760, %v2117_v30 }
  0x62   :  { %5613 = vmatmul.mubr.f32.gmra.mxu1 %v6252_v50  ;;  %7723 = vst [vmem:[#allocation12_spill] sm:$0xff] %v6536_v34  ;;  %7725 = vst [vmem:[#allocation13_spill] sm:$0xff] %v6542_v42  ;;  %5634 = vmatprep.subr.mxu0 %v6536_v34  ;;  %v6550_v49 = vsub.f32 %v1801_v29, %v6536_v34  ;;  %v2124_v53 = vsub.f32 %v6534_v33, %v6542_v42 }
  0x63   :  { %5587 = vmatmul.mubr.f32.gmra.mxu0 %v6252_v50  ;;  %5615 = vmatprep.mubr.f32.mxu1 %v6264_v54  ;;  %v6552_v50 = vand.u32 4294901760, %v1800_v43 }
  0x64   :  { %5589 = vmatprep.mubr.f32.mxu0 %v6264_v54  ;;  %5635 = vmatpush3.msra.mxu0 %v6536_v34  ;;  %7726 = vst [vmem:[#allocation14_spill] sm:$0xff] %v6550_v49  ;;  %v6557_v54 = vand.u32 4294901760, %v6550_v49 }
  0x65   :  { %7727 = vst [vmem:[#allocation15_spill] sm:$0xff] %v6552_v50  ;;  %5662 = vmatprep.subr.mxu1 %v2118_v41  ;;  %v6560_v58 = vsub.f32 %v1800_v43, %v6552_v50  ;;  %5636 = vmatprep.subr.mxu0 %v6552_v50 }
  0x66   :  { %5616 = vmatmul.mubr.f32.gmra.mxu1 %v6277_v59  ;;  %7728 = vst [vmem:[#allocation16_spill] sm:$0xff] %v6557_v54  ;;  %5637 = vmatpush3.msra.mxu0 %v6552_v50  ;;  %v2131_v60 = vsub.f32 %v6550_v49, %v6557_v54 }
  0x67   :  { %5590 = vmatmul.mubr.f32.gmra.mxu0 %v6277_v59  ;;  %5618 = vmatprep.mubr.f32.mxu1 %v6284_v61  ;;  %7729 = vst [vmem:[#allocation17_spill] sm:$0xff] %v6560_v58  ;;  %v2125_v59 = vand.u32 4294901760, %v2124_v53 }
  0x68   :  { %5592 = vmatprep.mubr.f32.mxu0 %v6284_v61  ;;  %5663 = vmatpush3.msra.mxu1 %v2118_v41  ;;  %v6567_v61 = vand.u32 4294901760, %v6560_v58  ;;  %v2132_v63 = vand.u32 4294901760, %v2131_v60 }
  0x69   :  { %5694 = vmatprep.subr.mxu0 %v6516_v15  ;;  %5664 = vmatprep.subr.mxu1 %v2125_v59 }
  0x6a   :  { %5619 = vmatmul.mubr.f32.gmra.mxu1 %v6311_v13  ;;  %7730 = vst [vmem:[#allocation18_spill] sm:$0xff] %v6567_v61  ;;  %v2138_v1 = vsub.f32 %v6560_v58, %v6567_v61 }
  0x6b   :  { %5593 = vmatmul.mubr.f32.gmra.mxu0 %v6311_v13  ;;  %5621 = vmatprep.mubr.f32.mxu1 %v6322_v17  ;;  %v5103_v13 = vld [vmem:[%s7652_s5] ss:$0 sm:$0xff] }
  0x6c   :  { %5595 = vmatprep.mubr.f32.mxu0 %v6322_v17  ;;  %5665 = vmatpush3.msra.mxu1 %v2125_v59  ;;  %v2139_v9 = vand.u32 4294901760, %v2138_v1 }
  0x6d   :  { %5666 = vmatprep.subr.mxu1 %v2132_v63 }
  0x6e   :  { %5622 = vmatmul.mubr.f32.gmra.mxu1 %v6340_v36 }
  0x6f   :  { %5596 = vmatmul.mubr.f32.gmra.mxu0 %v6340_v36  ;;  %5624 = vmatprep.mubr.f32.mxu1 %v6358_v51 }
  0x70   :  { %5598 = vmatprep.mubr.f32.mxu0 %v6358_v51  ;;  %5667 = vmatpush3.msra.mxu1 %v2132_v63 }
  0x71   :  { %5668 = vmatprep.subr.mxu1 %v2139_v9 }
  0x72   :  { %5625 = vmatmul.mubr.f32.gmra.mxu1 %v6379_v5 }
  0x73   :  { %5599 = vmatmul.mubr.f32.gmra.mxu0 %v6379_v5  ;;  %5627 = vmatprep.mubr.f32.mxu1 %v6386_v8 }
  0x74   :  { %5601 = vmatprep.mubr.f32.mxu0 %v6386_v8  ;;  %5669 = vmatpush3.msra.mxu1 %v2139_v9 }
  0x75   :  { %5726 = vmatprep.subr.mxu1 %v6512_v11 }
  0x76   :  { %5628 = vmatmul.mubr.f32.gmra.mxu1 %v6398_v28 }
  0x77   :  { %5602 = vmatmul.mubr.f32.gmra.mxu0 %v6398_v28 }
  0xce   :  { %v221_v17 = vpop.f32.mrf.mxu1 }
  0xcf   :  { %v145_v10 = vpop.f32.mrf.mxu0 }
  0xd0   :  { %v146_v16 = vadd.f32 %v5103_v13, %v145_v10  ;;  %v5453_v35 = vpop.f32.mrf.mxu1 }
  0xd1   :  { %v5448_v22 = vpop.f32.mrf.mxu0 }
  0xd2   :  { %v222_v32 = vadd.f32 %v221_v17, %v146_v16  ;;  %v369_v46 = vpop.f32.mrf.mxu1  ;;  %v6061_v17 = vmov 1966171168  }
  0xd3   :  { %v295_v36 = vpop.f32.mrf.mxu0  ;;  %v1681_v22 = vunpack.c.l.s4 %v6061_v17 }
  0xd4   :  { %v296_v45 = vadd.f32 %v295_v36, %v222_v32  ;;  %v5463_v62 = vpop.f32.mrf.mxu1  ;;  %v1683_v32 = vlaneseq }
  0xd5   :  { %v5458_v51 = vpop.f32.mrf.mxu0 }
  0xd6   :  { %v370_v57 = vadd.f32 %v369_v46, %v296_v45  ;;  %v515_v7 = vpop.f32.mrf.mxu1  ;;  %v1682_v51 = vunpack.c.0.s8 %v1681_v22 }
  0xd7   :  { %v443_v4 = vpop.f32.mrf.mxu0 }
  0xd8   :  { %v444_v5 = vadd.f32 %v443_v4, %v370_v57  ;;  %v5473_v31 = vpop.f32.mrf.mxu1  ;;  %v1684_v57 = vshrl.u32 %v1683_v32, 7 }
  0xd9   :  { %v5468_v8 = vpop.f32.mrf.mxu0 }
  0xda   :  { %v516_v26 = vadd.f32 %v515_v7, %v444_v5  ;;  %v6578_v44 = vpop.f32.mrf.mxu1  ;;  %v1685_v8 = vsub.s32 %v1682_v51, %v1684_v57  ;;  %v1730_v11 = vsub.s32 0, %v1684_v57 }
  0xdb   :  { %v6576_v28 = vpop.f32.mrf.mxu0 }
  0xdc   :  { %v6582_v56 = vpop.f32.mrf.mxu1  ;;  %v1679_v17 = vcombine.high %v516_v26, %v516_v26  ;;  %v1686_v22 = vrot.slane %v516_v26, %v1685_v8 }
  0xdd   :  { %v6580_v47 = vpop.f32.mrf.mxu0 }
  0xde   :  { %v6586_v2 = vpop.f32.mrf.mxu1  ;;  %v1693_v12 = vrot.slane %v1679_v17, %v1685_v8  ;;  %v1694_v51 = vcombine.high %v1686_v22, %v1686_v22  ;;  %v1702_v33 = vrot.slane %v1686_v22, %v1685_v8 }
  0xdf   :  { %v6584_v23 = vpop.f32.mrf.mxu0 }
  0xe0   :  { %v6590_v3 = vpop.f32.mrf.mxu1  ;;  %v1695_v24 = vcombine.high %v1693_v12, %v1693_v12  ;;  %v1716_v17 = vrot.slane %v1694_v51, %v1685_v8  ;;  %v1709_v34 = vrot.slane %v1693_v12, %v1685_v8  ;;  %v892_v51 = vadd.f32 %v6578_v44, %v6576_v28 }
  0xe1   :  { %v6588_v55 = vpop.f32.mrf.mxu0  ;;  %v886_v12 = vadd.f32 %v6582_v56, %v6580_v47  ;;  %v6692_v57 = vrot.slane %v1702_v33, %v1730_v11 }
  0xe2   :  { %v6594_v18 = vpop.f32.mrf.mxu1  ;;  %v1723_v27 = vrot.slane %v1695_v24, %v1685_v8  ;;  %v1725_v22 = vcombine.high %v1709_v34, %v1709_v34  ;;  %v904_v8 = vadd.f32 %v6586_v2, %v6584_v23  ;;  %v6708_v56 = vrot.slane %v1709_v34, %v1730_v11 }
  0xe3   :  { %v6592_v6 = vpop.f32.mrf.mxu0 }
  0xe4   :  { %v6598_v14 = vpop.f32.mrf.mxu1  ;;  %v916_v23 = vadd.f32 %v6594_v18, %v6592_v6  ;;  %v3006_v6 = vld [vmem:[%s7653_s2] sm:$0xff] }
  0xe5   :  { %v6596_v20 = vpop.f32.mrf.mxu0 }
  0xe6   :  { %v6602_v39 = vpop.f32.mrf.mxu1 }
  0xe7   :  { %v6600_v37 = vpop.f32.mrf.mxu0 }
  0xe8   :  { %v6606_v52 = vpop.f32.mrf.mxu1 }
  0xe9   :  { %v6604_v48 = vpop.f32.mrf.mxu0 }
  0xea   :  { %v6610_v21 = vpop.f32.mrf.mxu1  ;;  %v922_v34 = vadd.f32 %v6606_v52, %v6604_v48 }
  0xeb   :  { %v6608_v0 = vpop.f32.mrf.mxu0 }
  0xec   :  { %v6614_v30 = vpop.f32.mrf.mxu1 }
  0xed   :  { %v6612_v29 = vpop.f32.mrf.mxu0 }
  0xee   :  { %v6618_v43 = vpop.f32.mrf.mxu1 }
  0xef   :  { %v6616_v41 = vpop.f32.mrf.mxu0 }
  0xf0   :  { %v6622_v59 = vpop.f32.mrf.mxu1 }
  0xf1   :  { %v6620_v53 = vpop.f32.mrf.mxu0 }
  0xf2   :  { %v6626_v63 = vpop.f32.mrf.mxu1 }
  0xf3   :  { %v6624_v60 = vpop.f32.mrf.mxu0 }
  0xf4   :  { %v6630_v9 = vpop.f32.mrf.mxu1 }
  0xf5   :  { %v6628_v1 = vpop.f32.mrf.mxu0 }
  0xf6   :  { %v6634_v10 = vpop.f32.mrf.mxu1 }
  0xf7   :  { %v6632_v13 = vpop.f32.mrf.mxu0 }
  0xf8   :  { %v6638_v35 = vpop.f32.mrf.mxu1 }
  0xf9   :  { %v6636_v16 = vpop.f32.mrf.mxu0 }
  0xfa   :  { %v6640_v45 = vpop.f32.mrf.mxu1 }
  0xfb   :  { %v5530_v36 = vpop.f32.mrf.mxu0 }
  0xfc   :  { %v6642_v62 = vpop.f32.mrf.mxu1  ;;  %v1057_v28 = vadd.f32 %v5530_v36, %v892_v51  ;;  %v928_v36 = vadd.f32 %v6602_v39, %v6600_v37  ;;  %v952_v37 = vadd.f32 %v6618_v43, %v6616_v41 }
  0xfd   :  { %v1049_v46 = vpop.f32.mrf.mxu0 }
  0xfe   :  { %v6646_v5 = vpop.f32.mrf.mxu1  ;;  %v1237_v39 = vadd.f32 %v6640_v45, %v1057_v28 }
  0xff   :  { %v6644_v4 = vpop.f32.mrf.mxu0 }
 0x100   :  { %v6650_v31 = vpop.f32.mrf.mxu1  ;;  %v1071_v18 = vadd.f32 %v6644_v4, %v904_v8 }
 0x101   :  { %v6648_v7 = vpop.f32.mrf.mxu0 }
 0x102   :  { %v6654_v38 = vpop.f32.mrf.mxu1 }
 0x103   :  { %v6652_v19 = vpop.f32.mrf.mxu0  ;;  %7731 = vst [vmem:[#allocation19_spill] sm:$0xff] %v6654_v38 }
 0x104   :  { %v6658_v32 = vpop.f32.mrf.mxu1  ;;  %v1085_v48 = vadd.f32 %v6652_v19, %v916_v23  ;;  %v976_v19 = vadd.f32 %v6634_v10, %v6632_v13 }
 0x105   :  { %v6656_v25 = vpop.f32.mrf.mxu0  ;;  %7732 = vst [vmem:[#allocation20_spill] sm:$0xff] %v6658_v32 }
 0x106   :  { %v6662_v54 = vpop.f32.mrf.mxu1 }
 0x107   :  { %v6660_v61 = vpop.f32.mrf.mxu0  ;;  %7733 = vst [vmem:[#allocation21_spill] sm:$0xff] %v6662_v54 }
 0x108   :  { %v6666_v40 = vpop.f32.mrf.mxu1  ;;  %v1099_v45 = vadd.f32 %v6660_v61, %v928_v36 }
 0x109   :  { %v6664_v42 = vpop.f32.mrf.mxu0  ;;  %7734 = vst [vmem:[#allocation22_spill] sm:$0xff] %v6666_v40  ;;  %v1724_v40 = vcombine.high %v1702_v33, %v1702_v33  ;;  %v6710_v33 = vrot.slane %v1723_v27, %v1730_v11 }
 0x10a   :  { %v6670_v49 = vpop.f32.mrf.mxu1  ;;  %v7743_v13 = vld [vmem:[#allocation19_spill] sm:$0xff] }
 0x10b   :  { %v6668_v58 = vpop.f32.mrf.mxu0  ;;  %7736 = vst [vmem:[#allocation24_spill] sm:$0xff] %v6670_v49  ;;  %v1269_v10 = vadd.f32 %v7743_v13, %v1085_v48 }
 0x10c   :  { %7735 = vst [vmem:[#allocation23_spill] sm:$0xff] %v6668_v58  ;;  %v6674_v26 = vpop.f32.mrf.mxu1  ;;  %v1726_v58 = vcombine.high %v1716_v17, %v1716_v17 }
 0x10d   :  { %v6672_v15 = vpop.f32.mrf.mxu0  ;;  %7738 = vst [vmem:[#allocation26_spill] sm:$0xff] %v6674_v26  ;;  %v6700_v26 = vrot.slane %v1716_v17, %v1730_v11  ;;  %v6062_v17 = vmov 0  }
 0x10e   :  { %7737 = vst [vmem:[#allocation25_spill] sm:$0xff] %v6672_v15  ;;  %v6678_v54 = vpop.f32.mrf.mxu1  ;;  %v1727_v15 = vcombine.high %v1723_v27, %v1723_v27  ;;  %v6706_v47 = vrot.slane %v1726_v58, %v1730_v11  ;;  %v1050_v58 = vadd.f32 %v1049_v46, %v886_v12  ;;  %6054 = vset.pattern.permute.xlu0 %v6062_v17  ;;  %v7747_v28 = vld [vmem:[#allocation21_spill] sm:$0xff] }
 0x10f   :  { %v6676_v50 = vpop.f32.mrf.mxu0  ;;  %7739 = vst [vmem:[#allocation27_spill] sm:$0xff] %v6678_v54  ;;  %3011 = vperm.xlu0 %6054, %v3006_v6   ;;  %v1285_v23 = vadd.f32 %v7747_v28, %v1099_v45 }
 0x110   :  { %v6682_v38 = vpop.f32.mrf.mxu1  ;;  %v1229_v43 = vadd.f32 %v6642_v62, %v1050_v58  ;;  %v1127_v12 = vadd.f32 %v6676_v50, %v952_v37  ;;  %v7748_v17 = vld [vmem:[#allocation22_spill] sm:$0xff] }
 0x111   :  { %v6680_v32 = vpop.f32.mrf.mxu0  ;;  %7740 = vst [vmem:[#allocation28_spill] sm:$0xff] %v6682_v38  ;;  %v898_v38 = vadd.f32 %v6590_v3, %v6588_v55  ;;  %v6714_v55 = vrot.slane %v1725_v22, %v1730_v11  ;;  %v6716_v3 = vrot.slane %v1727_v15, %v1730_v11  ;;  %v934_v15 = vadd.f32 %v6614_v30, %v6612_v29 }
 0x112   :  { %v6690_v24 = vpop.f32.mrf.mxu1  ;;  %v964_v29 = vadd.f32 %v6626_v63, %v6624_v60  ;;  %v958_v30 = vadd.f32 %v6630_v9, %v6628_v1  ;;  %v1092_v60 = vadd.f32 %v6664_v42, %v922_v34 }
 0x113   :  { %v6684_v49 = vpop.f32.mrf.mxu0  ;;  %v7742_v63 = vld [vmem:[#allocation23_spill] sm:$0xff] }
 0x114   :  { %7741 = vst [vmem:[#allocation29_spill] sm:$0xff] %v6684_v49  ;;  %v6702_v49 = vrot.slane %v1724_v40, %v1730_v11  ;;  %v6704_v44 = vpop.f32.mrf.mxu1  ;;  %v910_v40 = vadd.f32 %v6598_v14, %v6596_v20  ;;  %v940_v11 = vadd.f32 %v6610_v21, %v6608_v0  ;;  %v1064_v20 = vadd.f32 %v6648_v7, %v898_v38  ;;  %v3007_v21 = vld [vmem:[%s7653_s2 + $0x8] sm:$0xff]  ;;  %v7744_v7 = vld [vmem:[#allocation20_spill] sm:$0xff] }
 0x115   :  { %v6698_v54 = vpop.f32.mrf.mxu0  ;;  %v946_v38 = vadd.f32 %v6622_v59, %v6620_v53  ;;  %v1253_v53 = vadd.f32 %v6646_v5, %v1071_v18  ;;  %3016 = vperm.xlu0 %6054, %v3007_v21   ;;  %v7745_v61 = vld [vmem:[#allocation25_spill] sm:$0xff]  ;;  %v1277_v6 = vadd.f32 %v7748_v17, %v1092_v60  ;;  %v7750_v21 = vld [vmem:[#allocation26_spill] sm:$0xff] }
 0x116   :  { %v6724_v27 = vpop.f32.mrf.mxu1  ;;  %v1078_v52 = vadd.f32 %v6656_v25, %v910_v40  ;;  %v970_v25 = vadd.f32 %v6638_v35, %v6636_v16  ;;  %v1245_v59 = vadd.f32 %v6650_v31, %v1064_v20  ;;  %v1113_v1 = vadd.f32 %v7742_v63, %v940_v11  ;;  %v7749_v11 = vld [vmem:[#allocation24_spill] sm:$0xff] }
 0x117   :  { %v5551_v2 = vpop.f32.mrf.mxu0  ;;  %v1106_v51 = vadd.f32 %v7745_v61, %v934_v15  ;;  %v1120_v5 = vadd.f32 %v6680_v32, %v946_v38  ;;  %v1134_v15 = vadd.f32 %v6698_v54, %v958_v30 }
 0x118   :  { %v6742_v0 = vpop.f32.mrf.mxu1  ;;  %v1261_v16 = vadd.f32 %v7744_v7, %v1078_v52  ;;  %v1301_v18 = vadd.f32 %v7749_v11, %v1113_v1  ;;  %v1155_v20 = vadd.f32 %v5551_v2, %v976_v19 }
 0x119   :  { %v6735_v14 = vpop.f32.mrf.mxu0  ;;  %v6776_v38 = vadd.f32 %v7750_v21, %v1106_v51 }
 0x11a   :  { %v5608_v4 = vpop.f32.mrf.mxu1 }
 0x11b   :  { %v5582_v41 = vpop.f32.mrf.mxu0  ;;  %v7746_v31 = vld [vmem:[#allocation29_spill] sm:$0xff] }
 0x11c   :  { %v1429_v46 = vadd.f32 %v5582_v41, %v1237_v39  ;;  %v1584_v22 = vpop.f32.mrf.mxu1  ;;  %v1141_v8 = vadd.f32 %v7746_v31, %v964_v29  ;;  %v7751_v29 = vld [vmem:[#allocation27_spill] sm:$0xff] }
 0x11d   :  { %v1422_v9 = vpop.f32.mrf.mxu0  ;;  %v6779_v41 = vadd.f32 %v7751_v29, %v1127_v12 }
 0x11e   :  { %v1591_v35 = vadd.f32 %v5608_v4, %v1429_v46  ;;  %v1423_v62 = vadd.f32 %v1422_v9, %v1229_v43  ;;  %v5611_v58 = vpop.f32.mrf.mxu1  ;;  %v7752_v43 = vld [vmem:[#allocation28_spill] sm:$0xff]  ;;  %v6785_v46 = vadd.f32 %v6690_v24, %v1141_v8 }
 0x11f   :  { %v5585_v42 = vpop.f32.mrf.mxu0  ;;  %v6782_v45 = vadd.f32 %v7752_v43, %v1120_v5 }
 0x120   :  { %v1769_v40 = vadd.f32 %v6692_v57, %v1591_v35  ;;  %v1585_v36 = vadd.f32 %v1584_v22, %v1423_v62  ;;  %v1441_v34 = vadd.f32 %v5585_v42, %v1253_v53  ;;  %v1596_v52 = vpop.f32.mrf.mxu1  ;;  %v6790_v53 = vadd.f32 %v6704_v44, %v1134_v15 }
 0x121   :  { %v1434_v50 = vpop.f32.mrf.mxu0  ;;  %v1148_v62 = vadd.f32 %v6735_v14, %v970_v25 }
 0x122   :  { %v1785_v37 = vmax.f32 %v1769_v40, 0.0  ;;  %v1768_v32 = vadd.f32 %v6692_v57, %v1585_v36  ;;  %v1603_v39 = vadd.f32 %v5611_v58, %v1441_v34  ;;  %v1435_v48 = vadd.f32 %v1434_v50, %v1245_v59  ;;  %v5614_v4 = vpop.f32.mrf.mxu1 }
 0x123   :  { %v5588_v54 = vpop.f32.mrf.mxu0  ;;  %v6793_v59 = vadd.f32 %v6724_v27, %v1155_v20  ;;  %v6818_v34 = vadd.f32 %v6742_v0, %v1148_v62  ;;  %v7753_v20 = vld [vmem:[#allocation7_spill] sm:$0xff] }
 0x124   :  { %v1816_v2 = vsel %vm54_vm3, %v1785_v37, 0  ;;  %v1784_v30 = vmax.f32 %v1768_v32, 0.0  ;;  %v1771_v57 = vadd.f32 %v6700_v26, %v1603_v39  ;;  %v1597_v19 = vadd.f32 %v1596_v52, %v1435_v48  ;;  %v1608_v35 = vpop.f32.mrf.mxu1  ;;  %v7754_v39 = vld [vmem:[#allocation10_spill] sm:$0xff]  ;;  %v7756_v62 = vld [vmem:[#allocation15_spill] sm:$0xff] }
 0x125   :  { %v6795_v60 = vand.u32 4294901760, %v1816_v2  ;;  %v1453_v63 = vadd.f32 %v5588_v54, %v1269_v10  ;;  %v1446_v1 = vpop.f32.mrf.mxu0 }
 0x126   :  { %v1813_v24 = vsel %vm54_vm3, %v1784_v30, 0  ;;  %v1787_v9 = vmax.f32 %v1771_v57, 0.0  ;;  %v1770_v13 = vadd.f32 %v6700_v26, %v1597_v19  ;;  %v1447_v7 = vadd.f32 %v1446_v1, %v1261_v16  ;;  %v5617_v31 = vpop.f32.mrf.mxu1  ;;  %v7755_v57 = vld [vmem:[#allocation12_spill] sm:$0xff] }
 0x127   :  { %v6801_v22 = vsub.f32 %v1816_v2, %v6795_v60  ;;  %v6803_v44 = vand.u32 4294901760, %v1813_v24  ;;  %v1615_v27 = vadd.f32 %v5614_v4, %v1453_v63  ;;  %v5591_v61 = vpop.f32.mrf.mxu0 }
 0x128   :  { %v1822_v51 = vsel %vm54_vm3, %v1787_v9, 0  ;;  %v1786_v10 = vmax.f32 %v1770_v13, 0.0  ;;  %v1609_v12 = vadd.f32 %v1608_v35, %v1447_v7  ;;  %v1465_v5 = vadd.f32 %v5591_v61, %v1285_v23  ;;  %v1620_v23 = vpop.f32.mrf.mxu1 }
 0x129   :  { %v1941_v8 = vand.u32 4294901760, %v6801_v22  ;;  %v6808_v26 = vsub.f32 %v1813_v24, %v6803_v44  ;;  %v6810_v16 = vand.u32 4294901760, %v1822_v51  ;;  %v1773_v14 = vadd.f32 %v6702_v49, %v1615_v27  ;;  %v1458_v25 = vpop.f32.mrf.mxu0  ;;  %5670 = vmatprep.mubr.f32.mxu1 %v6803_v44 }
 0x12a   :  { %v1819_v42 = vsel %vm54_vm3, %v1786_v10, 0  ;;  %v1772_v28 = vadd.f32 %v6702_v49, %v1609_v12  ;;  %v1627_v40 = vadd.f32 %v5617_v31, %v1465_v5  ;;  %v1459_v36 = vadd.f32 %v1458_v25, %v1277_v6  ;;  %5671 = vmatmul.mubr.f32.vlgmr.msra.gmra.mxu1 %v6795_v60  ;;  %v5620_v32 = vpop.f32.mrf.mxu1 }
 0x12b   :  { %v6823_v58 = vsub.f32 %v6801_v22, %v1941_v8  ;;  %v6825_v17 = vand.u32 4294901760, %v1819_v42  ;;  %v1789_v11 = vmax.f32 %v1773_v14, 0.0  ;;  %v5594_v15 = vpop.f32.mrf.mxu0  ;;  %5727 = vmatpush3.msra.mxu1 %v7753_v20  ;;  %v6832_v48 = vsub.f32 %v1822_v51, %v6810_v16 }
 0x12c   :  { %v1788_v49 = vmax.f32 %v1772_v28, 0.0  ;;  %v1775_v6 = vadd.f32 %v6706_v47, %v1627_v40  ;;  %v1621_v50 = vadd.f32 %v1620_v23, %v1459_v36  ;;  %v1477_v37 = vadd.f32 %v5594_v15, %v1301_v18  ;;  %5728 = vmatprep.subr.mxu1 %v7754_v39  ;;  %v1632_v30 = vpop.f32.mrf.mxu1 }
 0x12d   :  { %v1943_v0 = vand.u32 4294901760, %v6823_v58  ;;  %v1828_v52 = vsel %vm54_vm3, %v1789_v11, 0  ;;  %v1470_v21 = vpop.f32.mrf.mxu0  ;;  %5673 = vmatprep.mubr.f32.mxu1 %v6825_v17  ;;  %v1931_v29 = vand.u32 4294901760, %v6808_v26  ;;  %5729 = vmatpush3.msra.mxu1 %v7754_v39  ;;  %v6852_v9 = vsub.f32 %v1819_v42, %v6825_v17 }
 0x12e   :  { %v6838_v43 = vand.u32 4294901760, %v1828_v52  ;;  %v1825_v18 = vsel %vm54_vm3, %v1788_v49, 0  ;;  %v1791_v54 = vmax.f32 %v1775_v6, 0.0  ;;  %v1774_v2 = vadd.f32 %v6706_v47, %v1621_v50  ;;  %5674 = vmatmul.mubr.f32.gmra.mxu1 %v6810_v16  ;;  %5730 = vmatprep.subr.mxu1 %v7755_v57  ;;  %v5623_v35 = vpop.f32.mrf.mxu1 }
 0x12f   :  { %v6844_v19 = vand.u32 4294901760, %v1825_v18  ;;  %v1639_v4 = vadd.f32 %v5620_v32, %v1477_v37  ;;  %v1471_v63 = vadd.f32 %v1470_v21, %v6776_v38  ;;  %v5597_v1 = vpop.f32.mrf.mxu0  ;;  %v1932_v24 = vsub.f32 %v6808_v26, %v1931_v29  ;;  %5731 = vmatpush3.msra.mxu1 %v7755_v57  ;;  %v7757_v21 = vld [vmem:[#allocation8_spill] sm:$0xff] }
 0x130   :  { %v1834_v47 = vsel %vm54_vm3, %v1791_v54, 0  ;;  %v1790_v13 = vmax.f32 %v1774_v2, 0.0  ;;  %v1489_v7 = vadd.f32 %v5597_v1, %v6779_v41  ;;  %5732 = vmatprep.subr.mxu1 %v7756_v62  ;;  %v6858_v38 = vsub.f32 %v1828_v52, %v6838_v43  ;;  %v1644_v14 = vpop.f32.mrf.mxu1 }
 0x131   :  { %v6860_v27 = vand.u32 4294901760, %v1834_v47  ;;  %v1777_v61 = vadd.f32 %v6708_v56, %v1639_v4  ;;  %v1633_v51 = vadd.f32 %v1632_v30, %v1471_v63  ;;  %v1482_v10 = vpop.f32.mrf.mxu0  ;;  %5676 = vmatprep.mubr.f32.mxu1 %v6844_v19  ;;  %5733 = vmatpush3.msra.mxu1 %v7756_v62  ;;  %v1933_v31 = vand.u32 4294901760, %v1932_v24 }
 0x132   :  { %v1831_v12 = vsel %vm54_vm3, %v1790_v13, 0  ;;  %v1651_v5 = vadd.f32 %v5623_v35, %v1489_v7  ;;  %v1483_v41 = vadd.f32 %v1482_v10, %v6782_v45  ;;  %5677 = vmatmul.mubr.f32.gmra.mxu1 %v6838_v43  ;;  %5790 = vmatprep.subr.mxu1 %v7753_v20  ;;  %v6870_v25 = vsub.f32 %v1825_v18, %v6844_v19  ;;  %v5626_v11 = vpop.f32.mrf.mxu1 }
 0x133   :  { %v6872_v42 = vand.u32 4294901760, %v1831_v12  ;;  %v1793_v28 = vmax.f32 %v1777_v61, 0.0  ;;  %v1776_v40 = vadd.f32 %v6708_v56, %v1633_v51  ;;  %v5600_v36 = vpop.f32.mrf.mxu0  ;;  %5638 = vmatprep.mubr.f32.mxu0 %v1933_v31  ;;  %v1951_v15 = vand.u32 4294901760, %v6852_v9 }
 0x134   :  { %v1779_v23 = vadd.f32 %v6710_v33, %v1651_v5  ;;  %v1645_v58 = vadd.f32 %v1644_v14, %v1483_v41  ;;  %v1501_v45 = vadd.f32 %v5600_v36, %v6785_v46  ;;  %v6879_v49 = vsub.f32 %v1834_v47, %v6860_v27  ;;  %5639 = vmatmul.mubr.f32.vlgmr.msra.gmra.mxu0 %v1943_v0  ;;  %v1656_v54 = vpop.f32.mrf.mxu1  ;;  %v7759_v5 = vld [vmem:[#allocation14_spill] sm:$0xff] }
 0x135   :  { %v1840_v6 = vsel %vm54_vm3, %v1793_v28, 0  ;;  %v1792_v50 = vmax.f32 %v1776_v40, 0.0  ;;  %v1494_v37 = vpop.f32.mrf.mxu0  ;;  %5679 = vmatprep.mubr.f32.mxu1 %v6872_v42  ;;  %v1961_v56 = vand.u32 4294901760, %v6832_v48  ;;  %5695 = vmatpush3.msra.mxu0 %v7757_v21  ;;  %v1952_v30 = vsub.f32 %v6852_v9, %v1951_v15 }
 0x136   :  { %v6884_v32 = vand.u32 4294901760, %v1840_v6  ;;  %v1795_v52 = vmax.f32 %v1779_v23, 0.0  ;;  %v1778_v46 = vadd.f32 %v6710_v33, %v1645_v58  ;;  %v1663_v18 = vadd.f32 %v5626_v11, %v1501_v45  ;;  %5680 = vmatmul.mubr.f32.gmra.mxu1 %v6860_v27  ;;  %v7758_v33 = vld [vmem:[#allocation11_spill] sm:$0xff] }
 0x137   :  { %v1837_v2 = vsel %vm54_vm3, %v1792_v50, 0  ;;  %v1495_v0 = vadd.f32 %v1494_v37, %v6790_v53  ;;  %v1962_v4 = vsub.f32 %v6832_v48, %v1961_v56  ;;  %v5603_v63 = vpop.f32.mrf.mxu0  ;;  %5696 = vmatprep.subr.mxu0 %v7758_v33  ;;  %v6899_v1 = vsub.f32 %v1831_v12, %v6872_v42  ;;  %v5629_v53 = vpop.f32.mrf.mxu1  ;;  %v7760_v50 = vld [vmem:[#allocation17_spill] sm:$0xff] }
 0x138   :  { %v6901_v24 = vand.u32 4294901760, %v1837_v2  ;;  %v1846_v47 = vsel %vm54_vm3, %v1795_v52, 0  ;;  %v1794_v13 = vmax.f32 %v1778_v46, 0.0  ;;  %5697 = vmatpush3.msra.mxu0 %v7758_v33  ;;  %v6906_v7 = vsub.f32 %v1840_v6, %v6884_v32 }
 0x139   :  { %v1781_v35 = vadd.f32 %v6714_v55, %v1663_v18  ;;  %v1953_v61 = vand.u32 4294901760, %v1952_v30  ;;  %v1657_v51 = vadd.f32 %v1656_v54, %v1495_v0  ;;  %v1506_v10 = vpop.f32.mrf.mxu0  ;;  %5698 = vmatprep.subr.mxu0 %v7759_v5  ;;  %v6910_v12 = vand.u32 4294901760, %v1846_v47  ;;  %v1668_v58 = vpop.f32.mrf.mxu1 }
 0x13a   :  { %v1843_v41 = vsel %vm54_vm3, %v1794_v13, 0  ;;  %v1963_v31 = vand.u32 4294901760, %v1962_v4  ;;  %v1513_v14 = vadd.f32 %v5603_v63, %v6793_v59  ;;  %5682 = vmatprep.mubr.f32.mxu1 %v6901_v24  ;;  %5699 = vmatpush3.msra.mxu0 %v7759_v5  ;;  %v6917_v28 = vsub.f32 %v1837_v2, %v6901_v24  ;;  %v7761_v2 = vld [vmem:[#allocation9_spill] sm:$0xff] }
 0x13b   :  { %v6919_v40 = vand.u32 4294901760, %v1843_v41  ;;  %v1797_v36 = vmax.f32 %v1781_v35, 0.0  ;;  %5641 = vmatprep.mubr.f32.mxu0 %v1953_v61  ;;  %v1780_v23 = vadd.f32 %v6714_v55, %v1657_v51  ;;  %5683 = vmatmul.mubr.f32.gmra.mxu1 %v6884_v32  ;;  %v1507_v59 = vadd.f32 %v1506_v10, %v6818_v34 }
 0x13c   :  { %5642 = vmatmul.mubr.f32.gmra.mxu0 %v1963_v31  ;;  %v1675_v45 = vadd.f32 %v5629_v53, %v1513_v14  ;;  %v1971_v11 = vand.u32 4294901760, %v6870_v25  ;;  %v1981_v6 = vand.u32 4294901760, %v6858_v38  ;;  %5700 = vmatprep.subr.mxu0 %v7760_v50  ;;  %v1991_v55 = vand.u32 4294901760, %v6899_v1 }
 0x13d   :  { %v6928_v37 = vsub.f32 %v1843_v41, %v6919_v40  ;;  %v1852_v52 = vsel %vm54_vm3, %v1797_v36, 0  ;;  %v1796_v46 = vmax.f32 %v1780_v23, 0.0  ;;  %5685 = vmatprep.mubr.f32.mxu1 %v6919_v40  ;;  %5701 = vmatpush3.msra.mxu0 %v7760_v50  ;;  %v1669_v54 = vadd.f32 %v1668_v58, %v1507_v59 }
 0x13e   :  { %v6934_v21 = vand.u32 4294901760, %v1852_v52  ;;  %v1783_v34 = vadd.f32 %v6716_v3, %v1675_v45  ;;  %v1972_v18 = vsub.f32 %v6870_v25, %v1971_v11  ;;  %5758 = vmatprep.subr.mxu0 %v7761_v2  ;;  %v1982_v30 = vsub.f32 %v6858_v38, %v1981_v6 }
 0x13f   :  { %v1849_v0 = vsel %vm54_vm3, %v1796_v46, 0  ;;  %v1992_v4 = vsub.f32 %v6899_v1, %v1991_v55  ;;  %v2001_v63 = vand.u32 4294901760, %v6879_v49  ;;  %5686 = vmatmul.mubr.f32.gmra.mxu1 %v6910_v12  ;;  %v6951_v33 = vsub.f32 %v1846_v47, %v6910_v12 }
 0x140   :  { %v6953_v13 = vand.u32 4294901760, %v1849_v0  ;;  %v1799_v53 = vmax.f32 %v1783_v34, 0.0  ;;  %v1973_v35 = vand.u32 4294901760, %v1972_v18  ;;  %v1782_v61 = vadd.f32 %v6716_v3, %v1669_v54 }
 0x141   :  { %v1983_v51 = vand.u32 4294901760, %v1982_v30  ;;  %v1993_v10 = vand.u32 4294901760, %v1992_v4  ;;  %v2002_v5 = vsub.f32 %v6879_v49, %v2001_v63  ;;  %v2011_v47 = vand.u32 4294901760, %v6917_v28 }
 0x142   :  { %v6960_v41 = vsub.f32 %v1849_v0, %v6953_v13  ;;  %v1858_v31 = vsel %vm54_vm3, %v1799_v53, 0  ;;  %5644 = vmatprep.mubr.f32.mxu0 %v1973_v35  ;;  %5688 = vmatprep.mubr.f32.mxu1 %v6953_v13  ;;  %v2021_v14 = vand.u32 4294901760, %v6906_v7  ;;  %v6967_v3 = vsub.f32 %v1852_v52, %v6934_v21 }
 0x143   :  { %v1798_v36 = vmax.f32 %v1782_v61, 0.0  ;;  %5645 = vmatmul.mubr.f32.gmra.mxu0 %v1983_v51  ;;  %5689 = vmatmul.mubr.f32.gmra.mxu1 %v6934_v21  ;;  %v2031_v23 = vand.u32 4294901760, %v6928_v37  ;;  %v6971_v58 = vand.u32 4294901760, %v1858_v31  ;;  %v2003_v45 = vand.u32 4294901760, %v2002_v5 }
 0x144   :  { %5647 = vmatprep.mubr.f32.mxu0 %v1993_v10  ;;  %v2012_v59 = vsub.f32 %v6917_v28, %v2011_v47  ;;  %v2051_v50 = vand.u32 4294901760, %v6960_v41  ;;  %v2022_v52 = vsub.f32 %v6906_v7, %v2021_v14  ;;  %v2041_v18 = vand.u32 4294901760, %v6951_v33 }
 0x145   :  { %v1855_v46 = vsel %vm54_vm3, %v1798_v36, 0  ;;  %v2032_v34 = vsub.f32 %v6928_v37, %v2031_v23  ;;  %v6993_v35 = vsub.f32 %v1858_v31, %v6971_v58  ;;  %v2061_v10 = vand.u32 4294901760, %v6967_v3 }
 0x146   :  { %v6983_v54 = vand.u32 4294901760, %v1855_v46  ;;  %v2013_v0 = vand.u32 4294901760, %v2012_v59  ;;  %v2052_v53 = vsub.f32 %v6960_v41, %v2051_v50  ;;  %v2023_v61 = vand.u32 4294901760, %v2022_v52 }
 0x147   :  { %5648 = vmatmul.mubr.f32.gmra.mxu0 %v2003_v45  ;;  %v2033_v4 = vand.u32 4294901760, %v2032_v34  ;;  %v2042_v51 = vsub.f32 %v6951_v33, %v2041_v18  ;;  %v2062_v31 = vsub.f32 %v6967_v3, %v2061_v10 }
 0x148   :  { %v6986_v30 = vsub.f32 %v1855_v46, %v6983_v54  ;;  %5650 = vmatprep.mubr.f32.mxu0 %v2013_v0  ;;  %5691 = vmatprep.mubr.f32.mxu1 %v6983_v54  ;;  %v2053_v36 = vand.u32 4294901760, %v2052_v53  ;;  %v2081_v46 = vand.u32 4294901760, %v6993_v35 }
 0x149   :  { %5692 = vmatmul.mubr.f32.gmra.mxu1 %v6971_v58  ;;  %v2043_v59 = vand.u32 4294901760, %v2042_v51  ;;  %v2063_v52 = vand.u32 4294901760, %v2062_v31 }
 0x14a   :  { %5734 = vmatprep.mubr.f32.mxu1 %v1931_v29  ;;  %v2071_v5 = vand.u32 4294901760, %v6986_v30  ;;  %v2082_v34 = vsub.f32 %v6993_v35, %v2081_v46 }
 0x14b   :  { %5651 = vmatmul.mubr.f32.gmra.mxu0 %v2023_v61 }
 0x14c   :  { %5653 = vmatprep.mubr.f32.mxu0 %v2033_v4  ;;  %v2072_v45 = vsub.f32 %v6986_v30, %v2071_v5 }
 0x14d   :  { %5735 = vmatmul.mubr.f32.vlgmr.msra.gmra.mxu1 %v1941_v8  ;;  %v2083_v8 = vand.u32 4294901760, %v2082_v34 }
 0x14e   :  { %5737 = vmatprep.mubr.f32.mxu1 %v1951_v15  ;;  %5791 = vmatpush3.msra.mxu1 %v7753_v20  ;;  %v2073_v29 = vand.u32 4294901760, %v2072_v45  ;;  %v7762_v20 = vmov 0.0  }
 0x14f   :  { %5654 = vmatmul.mubr.f32.gmra.mxu0 %v2043_v59  ;;  %5792 = vmatprep.subr.mxu1 %v7754_v39 }
 0x150   :  { %5656 = vmatprep.mubr.f32.mxu0 %v2053_v36  ;;  %5793 = vmatpush3.msra.mxu1 %v7754_v39  ;;  %v7763_v39 = vld [vmem:[#allocation13_spill] sm:$0xff] }
 0x151   :  { %5738 = vmatmul.mubr.f32.gmra.mxu1 %v1961_v56  ;;  %5794 = vmatprep.subr.mxu1 %v7755_v57 }
 0x152   :  { %5740 = vmatprep.mubr.f32.mxu1 %v1971_v11  ;;  %5795 = vmatpush3.msra.mxu1 %v7755_v57  ;;  %v3138_v57 = vld [vmem:[%s7654_s8 + $0x10] sm:$0xff] }
 0x153   :  { %5657 = vmatmul.mubr.f32.gmra.mxu0 %v2063_v52  ;;  %5796 = vmatprep.subr.mxu1 %v7756_v62 }
 0x154   :  { %5659 = vmatprep.mubr.f32.mxu0 %v2073_v29  ;;  %5797 = vmatpush3.msra.mxu1 %v7756_v62  ;;  %v7107_v62 = vand.u32 4294901760, %v3138_v57 }
 0x155   :  { %5741 = vmatmul.mubr.f32.gmra.mxu1 %v1981_v6  ;;  %5833 = vmatprep.subr.mxu1 %v7762_v20 }
 0x156   :  { %5743 = vmatprep.mubr.f32.mxu1 %v1991_v55  ;;  %7768 = vst [vmem:[#allocation20_spill] sm:$0xff] %v7107_v62  ;;  %v7121_v15 = vsub.f32 %v3138_v57, %v7107_v62 }
 0x157   :  { %5660 = vmatmul.mubr.f32.gmra.mxu0 %v2083_v8 }
 0x158   :  { %5702 = vmatprep.mubr.f32.mxu0 %v6808_v26  ;;  %v7764_v26 = vld [vmem:[#allocation16_spill] sm:$0xff]  ;;  %7769 = vst [vmem:[#allocation25_spill] sm:$0xff] %v7121_v15 }
 0x159   :  { %5744 = vmatmul.mubr.f32.gmra.mxu1 %v2001_v63 }
 0x15a   :  { %5746 = vmatprep.mubr.f32.mxu1 %v2011_v47 }
 0x15b   :  { %5703 = vmatmul.mubr.f32.vlgmr.msra.gmra.mxu0 %v6801_v22  ;;  %v7765_v22 = vld [vmem:[#allocation18_spill] sm:$0xff] }
 0x15c   :  { %5705 = vmatprep.mubr.f32.mxu0 %v6852_v9  ;;  %5759 = vmatpush3.msra.mxu0 %v7761_v2 }
 0x15d   :  { %5747 = vmatmul.mubr.f32.gmra.mxu1 %v2021_v14  ;;  %5760 = vmatprep.subr.mxu0 %v7763_v39 }
 0x15e   :  { %5749 = vmatprep.mubr.f32.mxu1 %v2031_v23  ;;  %5761 = vmatpush3.msra.mxu0 %v7763_v39 }
 0x15f   :  { %5706 = vmatmul.mubr.f32.gmra.mxu0 %v6832_v48  ;;  %5762 = vmatprep.subr.mxu0 %v7764_v26 }
 0x160   :  { %5708 = vmatprep.mubr.f32.mxu0 %v6870_v25  ;;  %5763 = vmatpush3.msra.mxu0 %v7764_v26 }
 0x161   :  { %5750 = vmatmul.mubr.f32.gmra.mxu1 %v2041_v18  ;;  %5764 = vmatprep.subr.mxu0 %v7765_v22 }
 0x162   :  { %5752 = vmatprep.mubr.f32.mxu1 %v2051_v50  ;;  %5765 = vmatpush3.msra.mxu0 %v7765_v22 }
 0x163   :  { %5709 = vmatmul.mubr.f32.gmra.mxu0 %v6858_v38  ;;  %5822 = vmatprep.subr.mxu0 %v7762_v20  ;;  %v7112_v38 = vld [vmem:[%s7655_s7] ss:$0 sm:$0xff] }
 0x164   :  { %5711 = vmatprep.mubr.f32.mxu0 %v6899_v1 }
 0x165   :  { %5753 = vmatmul.mubr.f32.gmra.mxu1 %v2061_v10 }
 0x166   :  { %5755 = vmatprep.mubr.f32.mxu1 %v2071_v5 }
 0x167   :  { %5712 = vmatmul.mubr.f32.gmra.mxu0 %v6879_v49 }
 0x168   :  { %5714 = vmatprep.mubr.f32.mxu0 %v6917_v28 }
 0x169   :  { %5756 = vmatmul.mubr.f32.gmra.mxu1 %v2081_v46 }
 0x16a   :  { %5798 = vmatprep.mubr.f32.mxu1 %v6803_v44 }
 0x16b   :  { %5715 = vmatmul.mubr.f32.gmra.mxu0 %v6906_v7 }
 0x16c   :  { %5717 = vmatprep.mubr.f32.mxu0 %v6928_v37 }
 0x16d   :  { %5799 = vmatmul.mubr.f32.vlgmr.msra.gmra.mxu1 %v6795_v60 }
 0x16e   :  { %5801 = vmatprep.mubr.f32.mxu1 %v6825_v17 }
 0x16f   :  { %5718 = vmatmul.mubr.f32.gmra.mxu0 %v6951_v33 }
 0x170   :  { %5720 = vmatprep.mubr.f32.mxu0 %v6960_v41 }
 0x171   :  { %5802 = vmatmul.mubr.f32.gmra.mxu1 %v6810_v16 }
 0x172   :  { %5804 = vmatprep.mubr.f32.mxu1 %v6844_v19 }
 0x173   :  { %5721 = vmatmul.mubr.f32.gmra.mxu0 %v6967_v3 }
 0x174   :  { %5723 = vmatprep.mubr.f32.mxu0 %v6986_v30 }
 0x175   :  { %5805 = vmatmul.mubr.f32.gmra.mxu1 %v6838_v43 }
 0x176   :  { %5807 = vmatprep.mubr.f32.mxu1 %v6872_v42 }
 0x177   :  { %5724 = vmatmul.mubr.f32.gmra.mxu0 %v6993_v35 }
 0x178   :  { %5766 = vmatprep.mubr.f32.mxu0 %v6803_v44 }
 0x179   :  { %5808 = vmatmul.mubr.f32.gmra.mxu1 %v6860_v27 }
 0x17a   :  { %5810 = vmatprep.mubr.f32.mxu1 %v6901_v24 }
 0x17b   :  { %5767 = vmatmul.mubr.f32.vlgmr.msra.gmra.mxu0 %v6795_v60 }
 0x17c   :  { %5769 = vmatprep.mubr.f32.mxu0 %v6825_v17  ;;  %v3139_v17 = vld [vmem:[%s7654_s8 + $0x18] sm:$0xff] }
 0x17d   :  { %5811 = vmatmul.mubr.f32.gmra.mxu1 %v6884_v32 }
 0x17e   :  { %5813 = vmatprep.mubr.f32.mxu1 %v6919_v40 }
 0x17f   :  { %5770 = vmatmul.mubr.f32.gmra.mxu0 %v6810_v16 }
 0x180   :  { %5772 = vmatprep.mubr.f32.mxu0 %v6844_v19 }
 0x181   :  { %5814 = vmatmul.mubr.f32.gmra.mxu1 %v6910_v12 }
 0x182   :  { %5816 = vmatprep.mubr.f32.mxu1 %v6953_v13 }
 0x183   :  { %5773 = vmatmul.mubr.f32.gmra.mxu0 %v6838_v43  ;;  %v7096_v43 = vand.u32 4294901760, %v3139_v17 }
 0x184   :  { %5775 = vmatprep.mubr.f32.mxu0 %v6872_v42 }
 0x185   :  { %5817 = vmatmul.mubr.f32.gmra.mxu1 %v6934_v21  ;;  %7766 = vst [vmem:[#allocation23_spill] sm:$0xff] %v7096_v43  ;;  %5823 = vmatpush3.msra.mxu0 %v7096_v43  ;;  %v7105_v9 = vsub.f32 %v3139_v17, %v7096_v43 }
 0x186   :  { %5819 = vmatprep.mubr.f32.mxu1 %v6983_v54  ;;  %5824 = vmatprep.subr.mxu0 %v7762_v20 }
 0x187   :  { %5776 = vmatmul.mubr.f32.gmra.mxu0 %v6860_v27  ;;  %7767 = vst [vmem:[#allocation19_spill] sm:$0xff] %v7105_v9  ;;  %v3137_v27 = vld [vmem:[%s7654_s8 + $0x8] sm:$0xff]  ;;  %v7696_v42 = vand.u32 4294901760, %v7105_v9 }
 0x188   :  { %5778 = vmatprep.mubr.f32.mxu0 %v6901_v24  ;;  %5825 = vmatpush3.msra.mxu0 %v7107_v62  ;;  %v7123_v49 = vand.u32 4294901760, %v3137_v27 }
 0x189   :  { %5820 = vmatmul.mubr.f32.gmra.mxu1 %v6971_v58  ;;  %5826 = vmatprep.subr.mxu0 %v7762_v20  ;;  %v3257_v7 = vsub.f32 %v7105_v9, %v7696_v42 }
 0x18a   :  { %5841 = vmatprep.mubr.msk.f32.mxu1 %vm6060_vm2, %v7762_v20  ;;  %7770 = vst [vmem:[#allocation29_spill] sm:$0xff] %v7123_v49  ;;  %5827 = vmatpush3.msra.mxu0 %v7123_v49  ;;  %v7136_v28 = vsub.f32 %v3137_v27, %v7123_v49  ;;  %v7242_v43 = vpop.permute.xlu0 %3011 }
 0x18b   :  { %5779 = vmatmul.mubr.f32.gmra.mxu0 %v6884_v32  ;;  %v3136_v32 = vld [vmem:[%s7654_s8] sm:$0xff]  ;;  %5828 = vmatprep.subr.mxu0 %v7762_v20 }
 0x18c   :  { %5781 = vmatprep.mubr.f32.mxu0 %v6919_v40  ;;  %7771 = vst [vmem:[#allocation21_spill] sm:$0xff] %v7136_v28  ;;  %v7138_v11 = vand.u32 4294901760, %v3136_v32  ;;  %v7694_v63 = vand.u32 4294901760, %v7136_v28 }
 0x18e   :  { %7772 = vst [vmem:[#allocation22_spill] sm:$0xff] %v7138_v11  ;;  %v7149_v33 = vsub.f32 %v3136_v32, %v7138_v11  ;;  %5829 = vmatpush3.msra.mxu0 %v7138_v11  ;;  %v3271_v14 = vsub.f32 %v7136_v28, %v7694_v63 }
 0x18f   :  { %5782 = vmatmul.mubr.f32.gmra.mxu0 %v6910_v12  ;;  %v7695_v12 = vand.u32 4294901760, %v7121_v15  ;;  %5844 = vmatprep.subr.mxu0 %v7762_v20 }
 0x190   :  { %5784 = vmatprep.mubr.f32.mxu0 %v6953_v13  ;;  %7773 = vst [vmem:[#allocation24_spill] sm:$0xff] %v7149_v33  ;;  %v7693_v3 = vand.u32 4294901760, %v7149_v33  ;;  %v3272_v18 = vand.u32 4294901760, %v3271_v14 }
 0x191   :  { %v3264_v2 = vsub.f32 %v7121_v15, %v7695_v12 }
 0x193   :  { %5785 = vmatmul.mubr.f32.gmra.mxu0 %v6934_v21  ;;  %v3258_v21 = vand.u32 4294901760, %v3257_v7  ;;  %v3265_v41 = vand.u32 4294901760, %v3264_v2 }
 0x194   :  { %5787 = vmatprep.mubr.f32.mxu0 %v6983_v54  ;;  %v3278_v54 = vsub.f32 %v7149_v33, %v7693_v3 }
 0x195   :  { %5834 = vmatpush3.msra.mxu1 %v3258_v21 }
 0x196   :  { %5835 = vmatprep.subr.mxu1 %v7762_v20  ;;  %v3279_v35 = vand.u32 4294901760, %v3278_v54 }
 0x197   :  { %5788 = vmatmul.mubr.f32.gmra.mxu0 %v6971_v58  ;;  %5836 = vmatpush3.msra.mxu1 %v3265_v41 }
 0x198   :  { %5830 = vmatprep.mubr.msk.f32.mxu0 %vm6060_vm2, %v7762_v20  ;;  %5837 = vmatprep.subr.mxu1 %v7762_v20 }
 0x199   :  { %5838 = vmatpush3.msra.mxu1 %v3272_v18 }
 0x19a   :  { %5839 = vmatprep.subr.mxu1 %v7762_v20 }
 0x19b   :  { %5840 = vmatpush3.msra.mxu1 %v3279_v35 }
 0x19c   :  { %5855 = vmatprep.subr.mxu1 %v7762_v20 }
 0x1ea   :  { %v5672_v60 = vpop.f32.mrf.mxu1 }
 0x1ec   :  { %v2176_v44 = vpop.f32.mrf.mxu1 }
 0x1ee   :  { %v5675_v16 = vpop.f32.mrf.mxu1 }
 0x1f0   :  { %v2188_v48 = vpop.f32.mrf.mxu1 }
 0x1f2   :  { %v7101_v19 = vpop.f32.mrf.mxu1 }
 0x1f4   :  { %v2200_v25 = vpop.f32.mrf.mxu1  ;;  %v5640_v56 = vpop.f32.mrf.mxu0 }
 0x1f5   :  { %v1946_v1 = vadd.f32 %v5640_v56, %v7112_v38 }
 0x1f6   :  { %v5681_v24 = vpop.f32.mrf.mxu1  ;;  %v1935_v40 = vpop.f32.mrf.mxu0 }
 0x1f7   :  { %v1936_v6 = vadd.f32 %v7112_v38, %v1935_v40  ;;  %v7142_v55 = vadd.f32 %v5672_v60, %v1946_v1 }
 0x1f8   :  { %v2212_v37 = vpop.f32.mrf.mxu1 }
 0x1f9   :  { %v7152_v13 = vadd.f32 %v2176_v44, %v1936_v6 }
 0x1fb   :  { %v5684_v47 = vpop.f32.mrf.mxu1 }
 0x1fc   :  { %v5643_v23 = vpop.f32.mrf.mxu0 }
 0x1fd   :  { %v1966_v58 = vadd.f32 %v5643_v23, %v7112_v38  ;;  %v2224_v50 = vpop.f32.mrf.mxu1 }
 0x1fe   :  { %v1955_v0 = vpop.f32.mrf.mxu0 }
 0x1ff   :  { %v1956_v30 = vadd.f32 %v7112_v38, %v1955_v0  ;;  %v5687_v4 = vpop.f32.mrf.mxu1  ;;  %v7166_v53 = vadd.f32 %v5675_v16, %v1966_v58 }
 0x201   :  { %v7169_v61 = vpop.f32.mrf.mxu1  ;;  %v7171_v51 = vadd.f32 %v2188_v48, %v1956_v30 }
 0x203   :  { %v5646_v10 = vpop.f32.mrf.mxu0  ;;  %v7174_v5 = vpop.f32.mrf.mxu1 }
 0x204   :  { %v1986_v36 = vadd.f32 %v5646_v10, %v7112_v38 }
 0x205   :  { %v1975_v45 = vpop.f32.mrf.mxu0  ;;  %v7177_v59 = vpop.f32.mrf.mxu1 }
 0x206   :  { %v1976_v31 = vadd.f32 %v7112_v38, %v1975_v45  ;;  %v7181_v46 = vadd.f32 %v7101_v19, %v1986_v36 }
 0x207   :  { %v5649_v29 = vpop.f32.mrf.mxu0 }
 0x208   :  { %v2006_v52 = vadd.f32 %v5649_v29, %v7112_v38  ;;  %v7184_v34 = vadd.f32 %v2200_v25, %v1976_v31 }
 0x209   :  { %v1995_v8 = vpop.f32.mrf.mxu0  ;;  %v7186_v39 = vpop.f32.mrf.mxu1 }
 0x20a   :  { %v1996_v26 = vadd.f32 %v7112_v38, %v1995_v8  ;;  %v7189_v22 = vadd.f32 %v5681_v24, %v2006_v52 }
 0x20b   :  { %v5652_v60 = vpop.f32.mrf.mxu0  ;;  %v7191_v44 = vpop.f32.mrf.mxu1 }
 0x20c   :  { %v2026_v16 = vadd.f32 %v5652_v60, %v7112_v38  ;;  %v7194_v17 = vadd.f32 %v2212_v37, %v1996_v26 }
 0x20d   :  { %v2015_v48 = vpop.f32.mrf.mxu0  ;;  %v5736_v57 = vpop.f32.mrf.mxu1 }
 0x20e   :  { %v2016_v19 = vadd.f32 %v7112_v38, %v2015_v48  ;;  %v7197_v27 = vadd.f32 %v5684_v47, %v2026_v16 }
 0x20f   :  { %v5655_v25 = vpop.f32.mrf.mxu0  ;;  %v2528_v56 = vpop.f32.mrf.mxu1 }
 0x210   :  { %v2046_v32 = vadd.f32 %v5655_v25, %v7112_v38  ;;  %v7200_v1 = vadd.f32 %v2224_v50, %v2016_v19 }
 0x211   :  { %v2035_v24 = vpop.f32.mrf.mxu0  ;;  %v7202_v7 = vpop.f32.mrf.mxu1 }
 0x212   :  { %v7204_v40 = vadd.f32 %v5687_v4, %v2046_v32  ;;  %v2036_v9 = vadd.f32 %v7112_v38, %v2035_v24 }
 0x213   :  { %v5658_v6 = vpop.f32.mrf.mxu0  ;;  %v7206_v37 = vpop.f32.mrf.mxu1 }
 0x214   :  { %v2066_v62 = vadd.f32 %v5658_v6, %v7112_v38  ;;  %v2237_v6 = vadd.f32 %v7169_v61, %v2036_v9 }
 0x215   :  { %v2055_v21 = vpop.f32.mrf.mxu0  ;;  %v7208_v2 = vpop.f32.mrf.mxu1 }
 0x217   :  { %v5661_v41 = vpop.f32.mrf.mxu0  ;;  %v7210_v47 = vpop.f32.mrf.mxu1 }
 0x219   :  { %v2075_v14 = vpop.f32.mrf.mxu0  ;;  %v7212_v23 = vpop.f32.mrf.mxu1 }
 0x21b   :  { %v5704_v58 = vpop.f32.mrf.mxu0  ;;  %v7214_v50 = vpop.f32.mrf.mxu1 }
 0x21c   :  { %v2354_v15 = vadd.f32 %v5704_v58, %v7142_v55  ;;  %v2076_v55 = vadd.f32 %v7112_v38, %v2075_v14 }
 0x21d   :  { %v2346_v18 = vpop.f32.mrf.mxu0  ;;  %v7216_v54 = vpop.f32.mrf.mxu1 }
 0x21e   :  { %v2347_v20 = vadd.f32 %v2346_v18, %v7152_v13  ;;  %v2537_v58 = vadd.f32 %v5736_v57, %v2354_v15  ;;  %v2261_v9 = vadd.f32 %v7191_v44, %v2076_v55 }
 0x21f   :  { %v5707_v0 = vpop.f32.mrf.mxu0  ;;  %v7218_v30 = vpop.f32.mrf.mxu1 }
 0x220   :  { %v2368_v24 = vadd.f32 %v5707_v0, %v7166_v53 }
 0x221   :  { %v2360_v4 = vpop.f32.mrf.mxu0  ;;  %v7220_v35 = vpop.f32.mrf.mxu1 }
 0x223   :  { %v5710_v10 = vpop.f32.mrf.mxu0  ;;  %v7222_v36 = vpop.f32.mrf.mxu1 }
 0x224   :  { %v2382_v18 = vadd.f32 %v5710_v10, %v7181_v46  ;;  %v2553_v46 = vadd.f32 %v7202_v7, %v2368_v24 }
 0x225   :  { %v2374_v45 = vpop.f32.mrf.mxu0  ;;  %v7224_v31 = vpop.f32.mrf.mxu1 }
 0x226   :  { %7774 = vst [vmem:[#allocation26_spill] sm:$0xff] %v7224_v31  ;;  %v2569_v44 = vadd.f32 %v7208_v2, %v2382_v18 }
 0x227   :  { %v5713_v29 = vpop.f32.mrf.mxu0  ;;  %v7226_v52 = vpop.f32.mrf.mxu1 }
 0x228   :  { %7775 = vst [vmem:[#allocation27_spill] sm:$0xff] %v7226_v52 }
 0x229   :  { %v2388_v8 = vpop.f32.mrf.mxu0  ;;  %v7228_v26 = vpop.f32.mrf.mxu1 }
 0x22a   :  { %7776 = vst [vmem:[#allocation28_spill] sm:$0xff] %v7228_v26  ;;  %v2086_v26 = vadd.f32 %v5661_v41, %v7112_v38  ;;  %v2529_v41 = vadd.f32 %v2528_v56, %v2347_v20 }
 0x22b   :  { %v5716_v60 = vpop.f32.mrf.mxu0  ;;  %v7230_v16 = vpop.f32.mrf.mxu1 }
 0x22c   :  { %7777 = vst [vmem:[#allocation7_spill] sm:$0xff] %v7230_v16  ;;  %v2056_v16 = vadd.f32 %v7112_v38, %v2055_v21  ;;  %v2255_v21 = vadd.f32 %v7174_v5, %v2066_v62  ;;  %v2267_v53 = vadd.f32 %v7186_v39, %v2086_v26  ;;  %v2389_v62 = vadd.f32 %v2388_v8, %v7194_v17 }
 0x22d   :  { %v2402_v48 = vpop.f32.mrf.mxu0  ;;  %v5800_v19 = vpop.f32.mrf.mxu1  ;;  %v2410_v20 = vadd.f32 %v5716_v60, %v7197_v27  ;;  %v7783_v55 = vld [vmem:[#allocation26_spill] sm:$0xff] }
 0x22e   :  { %v2249_v38 = vadd.f32 %v7177_v59, %v2056_v16  ;;  %v2403_v5 = vadd.f32 %v2402_v48, %v7200_v1  ;;  %v2577_v8 = vadd.f32 %v7214_v50, %v2389_v62 }
 0x22f   :  { %v5719_v25 = vpop.f32.mrf.mxu0  ;;  %v2896_v32 = vpop.f32.mrf.mxu1  ;;  %v2601_v2 = vadd.f32 %v7216_v54, %v2410_v20 }
 0x231   :  { %v2416_v3 = vpop.f32.mrf.mxu0  ;;  %v5803_v63 = vpop.f32.mrf.mxu1 }
 0x232   :  { %v2417_v0 = vadd.f32 %v2416_v3, %v2237_v6  ;;  %v2593_v3 = vadd.f32 %v7218_v30, %v2403_v5 }
 0x233   :  { %v5722_v12 = vpop.f32.mrf.mxu0  ;;  %v2908_v42 = vpop.f32.mrf.mxu1 }
 0x235   :  { %v2430_v33 = vpop.f32.mrf.mxu0  ;;  %v7232_v28 = vpop.f32.mrf.mxu1 }
 0x236   :  { %7778 = vst [vmem:[#allocation10_spill] sm:$0xff] %v7232_v28 }
 0x237   :  { %v7236_v11 = vpop.f32.mrf.mxu0  ;;  %v7238_v49 = vpop.f32.mrf.mxu1 }
 0x238   :  { %7779 = vst [vmem:[#allocation12_spill] sm:$0xff] %v7238_v49  ;;  %v2361_v49 = vadd.f32 %v2360_v4, %v7171_v51  ;;  %v2452_v48 = vadd.f32 %v7236_v11, %v2267_v53 }
 0x239   :  { %v7246_v52 = vpop.f32.mrf.mxu0  ;;  %v7248_v31 = vpop.f32.mrf.mxu1 }
 0x23a   :  { %7780 = vst [vmem:[#allocation15_spill] sm:$0xff] %v7246_v52  ;;  %7781 = vst [vmem:[#allocation8_spill] sm:$0xff] %v7248_v31  ;;  %v2375_v52 = vadd.f32 %v2374_v45, %v7184_v34  ;;  %v2396_v31 = vadd.f32 %v5713_v29, %v7189_v22  ;;  %v7267_v22 = vpop.permute.xlu0 %3016  ;;  %v2545_v59 = vadd.f32 %v7206_v37, %v2361_v49 }
 0x23b   :  { %v5768_v13 = vpop.f32.mrf.mxu0  ;;  %v7260_v57 = vpop.f32.mrf.mxu1  ;;  %v2438_v37 = vadd.f32 %v5722_v12, %v2255_v21  ;;  %v7284_v12 = vadd.f32 %v7222_v36, %v2417_v0 }
 0x23c   :  { %v2738_v28 = vadd.f32 %v5768_v13, %v2537_v58  ;;  %v2561_v17 = vadd.f32 %v7210_v47, %v2375_v52  ;;  %v2585_v27 = vadd.f32 %v7212_v23, %v2396_v31  ;;  %v7785_v13 = vld [vmem:[#allocation27_spill] sm:$0xff] }
 0x23d   :  { %v2731_v15 = vpop.f32.mrf.mxu0  ;;  %v7272_v4 = vpop.f32.mrf.mxu1  ;;  %v7291_v24 = vadd.f32 %v7783_v55, %v2438_v37 }
 0x23e   :  { %v2903_v61 = vadd.f32 %v5800_v19, %v2738_v28  ;;  %v2732_v51 = vadd.f32 %v2731_v15, %v2529_v41  ;;  %v2424_v28 = vadd.f32 %v5719_v25, %v7204_v40  ;;  %v2431_v40 = vadd.f32 %v2430_v33, %v2249_v38 }
 0x23f   :  { %v5771_v34 = vpop.f32.mrf.mxu0  ;;  %v2944_v52 = vpop.f32.mrf.mxu1  ;;  %v7784_v58 = vld [vmem:[#allocation12_spill] sm:$0xff] }
 0x240   :  { %v2991_v39 = vmax.f32 %v2903_v61, 0.0  ;;  %v2897_v56 = vadd.f32 %v2896_v32, %v2732_v51  ;;  %v2750_v14 = vadd.f32 %v5771_v34, %v2553_v46  ;;  %v2617_v16 = vadd.f32 %v7220_v35, %v2424_v28 }
 0x241   :  { %v2743_v7 = vpop.f32.mrf.mxu0  ;;  %v7296_v18 = vadd.f32 %v7785_v13, %v2431_v40  ;;  %v7786_v21 = vld [vmem:[#allocation15_spill] sm:$0xff]  ;;  %v5815_v15 = vpop.f32.mrf.mxu1  ;;  %v7787_v62 = vld [vmem:[#allocation8_spill] sm:$0xff] }
 0x242   :  { %v2990_v1 = vmax.f32 %v2897_v56, 0.0  ;;  %v2915_v10 = vadd.f32 %v5803_v63, %v2750_v14  ;;  %v3020_v45 = vmul.f32 %v7267_v22, %v2991_v39  ;;  %v2744_v49 = vadd.f32 %v2743_v7, %v2545_v59  ;;  %v7788_v14 = vld [vmem:[#allocation28_spill] sm:$0xff] }
 0x243   :  { %v5774_v29 = vpop.f32.mrf.mxu0  ;;  %v2445_v41 = vadd.f32 %v7786_v21, %v2261_v9 }
 0x244   :  { %v3019_v26 = vmul.f32 %v7242_v43, %v2990_v1  ;;  %v2993_v60 = vmax.f32 %v2915_v10, 0.0  ;;  %v2909_v47 = vadd.f32 %v2908_v42, %v2744_v49  ;;  %v3036_v23 = vsel %vm54_vm3, %v3020_v45, 0.0  ;;  %v7782_v42 = vld [vmem:[#allocation10_spill] sm:$0xff]  ;;  %v2956_v10 = vpop.f32.mrf.mxu1  ;;  %v7789_v49 = vld [vmem:[#allocation7_spill] sm:$0xff] }
 0x245   :  { %v2762_v31 = vadd.f32 %v5774_v29, %v2569_v44  ;;  %v2755_v63 = vpop.f32.mrf.mxu0  ;;  %v7304_v44 = vadd.f32 %v7788_v14, %v2452_v48  ;;  %v7310_v37 = vadd.f32 %v7789_v49, %v2445_v41 }
 0x246   :  { %v3035_v50 = vsel %vm54_vm3, %v3019_v26, 0.0  ;;  %v2992_v54 = vmax.f32 %v2909_v47, 0.0  ;;  %v3022_v30 = vmul.f32 %v7267_v22, %v2993_v60  ;;  %v2756_v33 = vadd.f32 %v2755_v63, %v2561_v17 }
 0x247   :  { %v3037_v19 = vadd.f32 %v3036_v23, %v3035_v50  ;;  %v2927_v25 = vadd.f32 %v7782_v42, %v2762_v31  ;;  %v5777_v32 = vpop.f32.mrf.mxu0 }
 0x248   :  { %v3021_v35 = vmul.f32 %v7242_v43, %v2992_v54  ;;  %v2921_v36 = vadd.f32 %v7784_v58, %v2756_v33  ;;  %v2774_v6 = vadd.f32 %v5777_v32, %v2585_v27  ;;  %v3045_v11 = vsel %vm54_vm3, %v3022_v30, 0.0 }
 0x249   :  { %v3038_v38 = vrot.slane %v3037_v19, 4  ;;  %v2995_v53 = vmax.f32 %v2927_v25, 0.0  ;;  %v2767_v61 = vpop.f32.mrf.mxu0 }
 0x24a   :  { %v3044_v51 = vsel %vm54_vm3, %v3021_v35, 0.0  ;;  %v2994_v46 = vmax.f32 %v2921_v36, 0.0  ;;  %v2939_v20 = vadd.f32 %v7787_v62, %v2774_v6  ;;  %v2768_v5 = vadd.f32 %v2767_v61, %v2577_v8 }
 0x24b   :  { %v3039_v34 = vadd.f32 %v3038_v38, %v3037_v19  ;;  %v3046_v59 = vadd.f32 %v3045_v11, %v3044_v51  ;;  %v3024_v39 = vmul.f32 %v7267_v22, %v2995_v53  ;;  %v5780_v56 = vpop.f32.mrf.mxu0  ;;  %v5818_v19 = vpop.f32.mrf.mxu1 }
 0x24c   :  { %v3023_v9 = vmul.f32 %v7242_v43, %v2994_v46  ;;  %v2997_v28 = vmax.f32 %v2939_v20, 0.0  ;;  %v2933_v0 = vadd.f32 %v7260_v57, %v2768_v5  ;;  %v2786_v7 = vadd.f32 %v5780_v56, %v2601_v2 }
 0x24d   :  { %v3040_v17 = vrot.slane %v3039_v34, 2  ;;  %v3047_v27 = vrot.slane %v3046_v59, 4  ;;  %v3054_v1 = vsel %vm54_vm3, %v3024_v39, 0.0  ;;  %v2779_v45 = vpop.f32.mrf.mxu0  ;;  %v2968_v61 = vpop.f32.mrf.mxu1 }
 0x24e   :  { %v3053_v29 = vsel %vm54_vm3, %v3023_v9, 0.0  ;;  %v3026_v8 = vmul.f32 %v7267_v22, %v2997_v28  ;;  %v2996_v40 = vmax.f32 %v2933_v0, 0.0  ;;  %v2951_v26 = vadd.f32 %v7272_v4, %v2786_v7 }
 0x24f   :  { %v3041_v60 = vadd.f32 %v3040_v17, %v3039_v34  ;;  %v3048_v57 = vadd.f32 %v3047_v27, %v3046_v59  ;;  %v3055_v2 = vadd.f32 %v3054_v1, %v3053_v29  ;;  %v2780_v47 = vadd.f32 %v2779_v45, %v2593_v3  ;;  %v5783_v23 = vpop.f32.mrf.mxu0  ;;  %v5821_v1 = vpop.f32.mrf.mxu1 }
 0x250   :  { %v3063_v31 = vsel %vm54_vm3, %v3026_v8, 0.0  ;;  %v3025_v63 = vmul.f32 %v7242_v43, %v2996_v40  ;;  %v2999_v50 = vmax.f32 %v2951_v26, 0.0  ;;  %v2798_v54 = vadd.f32 %v5783_v23, %v2617_v16 }
 0x251   :  { %v3042_v30 = vrot.slane %v3041_v60, 1  ;;  %v3049_v33 = vrot.slane %v3048_v57, 2  ;;  %v3056_v48 = vrot.slane %v3055_v2, 4  ;;  %v2945_v42 = vadd.f32 %v2944_v52, %v2780_v47  ;;  %v2791_v25 = vpop.f32.mrf.mxu0 }
 0x252   :  { %v3062_v4 = vsel %vm54_vm3, %v3025_v63, 0.0  ;;  %v3028_v32 = vmul.f32 %v7267_v22, %v2999_v50  ;;  %v2963_v55 = vadd.f32 %v5815_v15, %v2798_v54  ;;  %v2792_v3 = vadd.f32 %v2791_v25, %v7284_v12 }
 0x253   :  { %v3043_v35 = vadd.f32 %v3042_v30, %v3041_v60  ;;  %v3050_v58 = vadd.f32 %v3049_v33, %v3048_v57  ;;  %v3057_v36 = vadd.f32 %v3056_v48, %v3055_v2  ;;  %v3064_v6 = vadd.f32 %v3063_v31, %v3062_v4  ;;  %v5786_v13 = vpop.f32.mrf.mxu0  ;;  %v2980_v30 = vpop.f32.mrf.mxu1 }
 0x254   :  { %v3072_v16 = vsel %vm54_vm3, %v3028_v32, 0.0  ;;  %v2998_v21 = vmax.f32 %v2945_v42, 0.0  ;;  %v3001_v41 = vmax.f32 %v2963_v55, 0.0  ;;  %v2957_v38 = vadd.f32 %v2956_v10, %v2792_v3 }
 0x255   :  { %v3051_v52 = vrot.slane %v3050_v58, 1  ;;  %v3058_v11 = vrot.slane %v3057_v36, 2  ;;  %v3065_v53 = vrot.slane %v3064_v6, 4  ;;  %v2810_v51 = vadd.f32 %v5786_v13, %v7291_v24  ;;  %v2803_v46 = vpop.f32.mrf.mxu0 }
 0x256   :  { %v3027_v12 = vmul.f32 %v7242_v43, %v2998_v21  ;;  %v3030_v15 = vmul.f32 %v7267_v22, %v3001_v41  ;;  %v3000_v62 = vmax.f32 %v2957_v38, 0.0  ;;  %v2804_v20 = vadd.f32 %v2803_v46, %v7296_v18 }
 0x257   :  { %v3052_v5 = vadd.f32 %v3051_v52, %v3050_v58  ;;  %v3059_v34 = vadd.f32 %v3058_v11, %v3057_v36  ;;  %v3066_v59 = vadd.f32 %v3065_v53, %v3064_v6  ;;  %v2975_v39 = vadd.f32 %v5818_v19, %v2810_v51  ;;  %v5789_v56 = vpop.f32.mrf.mxu0 }
 0x258   :  { %v3071_v14 = vsel %vm54_vm3, %v3027_v12, 0.0  ;;  %v3081_v9 = vsel %vm54_vm3, %v3030_v15, 0.0  ;;  %v3029_v24 = vmul.f32 %v7242_v43, %v3000_v62  ;;  %v2969_v28 = vadd.f32 %v2968_v61, %v2804_v20 }
 0x259   :  { %v3116_v0 = vsel %vm3115_vm4, %v3052_v5, %v3043_v35  ;;  %v3060_v7 = vrot.slane %v3059_v34, 1  ;;  %v3067_v17 = vrot.slane %v3066_v59, 2  ;;  %v3073_v27 = vadd.f32 %v3072_v16, %v3071_v14  ;;  %v2815_v10 = vpop.f32.mrf.mxu0 }
 0x25a   :  { %v3080_v18 = vsel %vm54_vm3, %v3029_v24, 0.0  ;;  %v3003_v45 = vmax.f32 %v2975_v39, 0.0  ;;  %v3002_v49 = vmax.f32 %v2969_v28, 0.0  ;;  %v2822_v29 = vadd.f32 %v5789_v56, %v7304_v44  ;;  %v3008_v39 = vld [vmem:[#allocation2] sm:$0xff] }
 0x25b   :  { %v3061_v8 = vadd.f32 %v3060_v7, %v3059_v34  ;;  %v3068_v40 = vadd.f32 %v3067_v17, %v3066_v59  ;;  %v3074_v26 = vrot.slane %v3073_v27, 4  ;;  %v3082_v60 = vadd.f32 %v3081_v9, %v3080_v18  ;;  %v7792_v18 = vld [vmem:[#allocation20_spill] sm:$0xff] }
 0x25c   :  { %v3032_v57 = vmul.f32 %v7267_v22, %v3003_v45  ;;  %v3031_v2 = vmul.f32 %v7242_v43, %v3002_v49  ;;  %v2987_v47 = vadd.f32 %v5821_v1, %v2822_v29  ;;  %v2816_v23 = vadd.f32 %v2815_v10, %v7310_v37  ;;  %v7793_v49 = vld [vmem:[#allocation29_spill] sm:$0xff] }
 0x25d   :  { %v3118_v31 = vsel %vm3117_vm5, %v3061_v8, %v3116_v0  ;;  %v3069_v63 = vrot.slane %v3068_v40, 1  ;;  %v3075_v50 = vadd.f32 %v3074_v26, %v3073_v27  ;;  %v3083_v54 = vrot.slane %v3082_v60, 4  ;;  %v7790_v27 = vld [vmem:[#allocation23_spill] sm:$0xff]  ;;  %v7794_v8 = vld [vmem:[#allocation22_spill] sm:$0xff]  ;;  %v7796_v26 = vld [vmem:[#allocation25_spill] sm:$0xff] }
 0x25e   :  { %v3090_v33 = vsel %vm54_vm3, %v3032_v57, 0.0  ;;  %v3089_v44 = vsel %vm54_vm3, %v3031_v2, 0.0  ;;  %v3005_v48 = vmax.f32 %v2987_v47, 0.0  ;;  %v2981_v19 = vadd.f32 %v2980_v30, %v2816_v23  ;;  %v7798_v57 = vld [vmem:[#allocation24_spill] sm:$0xff] }
 0x25f   :  { %v3070_v42 = vadd.f32 %v3069_v63, %v3068_v40  ;;  %v3076_v25 = vrot.slane %v3075_v50, 2  ;;  %v3084_v4 = vadd.f32 %v3083_v54, %v3082_v60  ;;  %v3091_v32 = vadd.f32 %v3090_v33, %v3089_v44  ;;  %v7795_v40 = vld [vmem:[#allocation19_spill] sm:$0xff]  ;;  %v7797_v60 = vld [vmem:[#allocation21_spill] sm:$0xff]  ;;  %v3638_v54 = vld [vmem:[%s7656_s10 + $0x10] sm:$0xff] }
 0x260   :  { %v3034_v55 = vmul.f32 %v7267_v22, %v3005_v48  ;;  %v3004_v3 = vmax.f32 %v2981_v19, 0.0  ;;  %v7791_v1 = vmov 0.0   ;;  %v7799_v2 = vand.u32 4294901760, %v7795_v40  ;;  %v3639_v63 = vld [vmem:[%s7656_s10 + $0x18] sm:$0xff]  ;;  %v3637_v44 = vld [vmem:[%s7656_s10 + $0x8] sm:$0xff] }
 0x261   :  { %v3120_v37 = vsel %vm3119_vm6, %v3070_v42, %v3118_v31  ;;  %v3077_v35 = vadd.f32 %v3076_v25, %v3075_v50  ;;  %v3085_v58 = vrot.slane %v3084_v4, 2  ;;  %v3092_v36 = vrot.slane %v3091_v32, 4  ;;  %v3636_v25 = vld [vmem:[%s7656_s10] sm:$0xff] }
 0x262   :  { %v3033_v6 = vmul.f32 %v7242_v43, %v3004_v3  ;;  %v3099_v41 = vsel %vm54_vm3, %v3034_v55, 0.0  ;;  %v7800_v47 = vand.u32 4294901760, %v7796_v26  ;;  %v7801_v23 = vand.u32 4294901760, %v7797_v60 }
 0x263   :  { %v3078_v13 = vrot.slane %v3077_v35, 1  ;;  %v3086_v16 = vadd.f32 %v3085_v58, %v3084_v4  ;;  %v3093_v21 = vadd.f32 %v3092_v36, %v3091_v32  ;;  %v7802_v31 = vand.u32 4294901760, %v7798_v57 }
 0x264   :  { %v3098_v38 = vsel %vm54_vm3, %v3033_v6, 0.0  ;;  %v7395_v50 = vand.u32 4294901760, %v3639_v63  ;;  %v7403_v33 = vand.u32 4294901760, %v3638_v54  ;;  %v7414_v42 = vand.u32 4294901760, %v3637_v44 }
 0x265   :  { %v3079_v52 = vadd.f32 %v3078_v13, %v3077_v35  ;;  %v3087_v11 = vrot.slane %v3086_v16, 1  ;;  %v3094_v53 = vrot.slane %v3093_v21, 2  ;;  %v3100_v22 = vadd.f32 %v3099_v41, %v3098_v38 }
 0x266   :  { %v7401_v30 = vsub.f32 %v3639_v63, %v7395_v50  ;;  %v7412_v19 = vsub.f32 %v3638_v54, %v7403_v33  ;;  %v7426_v55 = vsub.f32 %v3637_v44, %v7414_v42  ;;  %v7428_v3 = vand.u32 4294901760, %v3636_v25 }
 0x267   :  { %v3122_v61 = vsel %vm3121_vm7, %v3079_v52, %v3120_v37  ;;  %v3088_v51 = vadd.f32 %v3087_v11, %v3086_v16  ;;  %v3095_v46 = vadd.f32 %v3094_v53, %v3093_v21  ;;  %v3101_v12 = vrot.slane %v3100_v22, 4 }
 0x268   :  { %v3756_v48 = vand.u32 4294901760, %v7401_v30  ;;  %v3763_v32 = vand.u32 4294901760, %v7412_v19  ;;  %v3770_v58 = vand.u32 4294901760, %v7426_v55  ;;  %v7437_v36 = vsub.f32 %v3636_v25, %v7428_v3 }
 0x269   :  { %v3124_v15 = vsel %vm3123_vm8, %v3088_v51, %v3122_v61  ;;  %v3102_v62 = vadd.f32 %v3101_v12, %v3100_v22  ;;  %v3096_v43 = vrot.slane %v3095_v46, 1 }
 0x26a   :  { %v3757_v4 = vsub.f32 %v7401_v30, %v3756_v48  ;;  %v3764_v35 = vsub.f32 %v7412_v19, %v3763_v32  ;;  %v3771_v13 = vsub.f32 %v7426_v55, %v3770_v58  ;;  %v3777_v16 = vand.u32 4294901760, %v7437_v36 }
 0x26b   :  { %v3103_v20 = vrot.slane %v3102_v62, 2  ;;  %v3097_v34 = vadd.f32 %v3096_v43, %v3095_v46  ;;  %v5105_v46 = vld [vmem:[%s7657_s9] ss:$0 sm:$0xff] }
 0x26c   :  { %v3758_v37 = vand.u32 4294901760, %v3757_v4  ;;  %v3765_v6 = vand.u32 4294901760, %v3764_v35  ;;  %v3772_v21 = vand.u32 4294901760, %v3771_v13  ;;  %v3778_v41 = vsub.f32 %v7437_v36, %v3777_v16 }
 0x26d   :  { %v3104_v5 = vadd.f32 %v3103_v20, %v3102_v62  ;;  %v3126_v14 = vsel %vm3125_vm9, %v3097_v34, %v3124_v15 }
 0x26e   :  { %v3779_v38 = vand.u32 4294901760, %v3778_v41 }
 0x26f   :  { %v3105_v59 = vrot.slane %v3104_v5, 1 }
 0x271   :  { %v3106_v56 = vadd.f32 %v3105_v59, %v3104_v5 }
 0x273   :  { %v3128_v9 = vsel %vm3127_vm10, %v3106_v56, %v3126_v14 }
 0x274   :  { %v3130_v24 = vadd.f32 %v3128_v9, %v3008_v39 }
 0x276   :  { %3131 = vst.msk [vmem:[#allocation2] sm:$0xff] %vm54_vm3, %v3130_v24 }
 0x27d   :  { %v3135_v28 = vld [vmem:[#allocation2] sm:$0xff] }
 0x27e   :  { %v3148_v0 = vsel %vm54_vm3, %v3135_v28, 0 }
 0x27f   :  { %v3219_v7 = vand.u32 4294901760, %v3148_v0 }
 0x281   :  { %5842 = vmatmul.mubr.f32.vlgmr.msra.gmra.mxu1 %v3219_v7  ;;  %v3220_v17 = vsub.f32 %v3148_v0, %v3219_v7 }
 0x282   :  { %5856 = vmatpush3.msra.mxu1 %v7790_v27  ;;  %5863 = vmatprep.mubr.msk.f32.mxu1 %vm6060_vm2, %v7791_v1 }
 0x283   :  { %5857 = vmatprep.subr.mxu1 %v7791_v1  ;;  %v3221_v10 = vand.u32 4294901760, %v3220_v17 }
 0x284   :  { %5858 = vmatpush3.msra.mxu1 %v7792_v18 }
 0x285   :  { %5859 = vmatprep.subr.mxu1 %v7791_v1  ;;  %v3222_v45 = vsub.f32 %v3220_v17, %v3221_v10 }
 0x286   :  { %5860 = vmatpush3.msra.mxu1 %v7793_v49 }
 0x287   :  { %5861 = vmatprep.subr.mxu1 %v7791_v1  ;;  %v3223_v29 = vand.u32 4294901760, %v3222_v45 }
 0x288   :  { %5862 = vmatpush3.msra.mxu1 %v7794_v8 }
 0x289   :  { %5864 = vmatmul.mubr.f32.vlgmr.msra.gmra.mxu1 %v3221_v10  ;;  %5877 = vmatprep.subr.mxu1 %v7791_v1 }
 0x28a   :  { %5831 = vmatmul.mubr.f32.vlgmr.msra.gmra.mxu0 %v3223_v29  ;;  %5878 = vmatpush3.msra.mxu1 %v7790_v27 }
 0x28b   :  { %5845 = vmatpush3.msra.mxu0 %v7795_v40  ;;  %5879 = vmatprep.subr.mxu1 %v7791_v1  ;;  %v4138_v40 = vld [vmem:[%s7658_s13 + $0x8] sm:$0xff] }
 0x28c   :  { %5846 = vmatprep.subr.mxu0 %v7791_v1  ;;  %5880 = vmatpush3.msra.mxu1 %v7792_v18  ;;  %v4140_v18 = vld [vmem:[%s7658_s13 + $0x18] sm:$0xff] }
 0x28d   :  { %5847 = vmatpush3.msra.mxu0 %v7796_v26  ;;  %5881 = vmatprep.subr.mxu1 %v7791_v1  ;;  %v7507_v45 = vand.u32 4294901760, %v4140_v18 }
 0x28e   :  { %5848 = vmatprep.subr.mxu0 %v7791_v1  ;;  %5882 = vmatpush3.msra.mxu1 %v7793_v49  ;;  %v4139_v49 = vld [vmem:[%s7658_s13 + $0x10] sm:$0xff] }
 0x28f   :  { %5849 = vmatpush3.msra.mxu0 %v7797_v60  ;;  %5883 = vmatprep.subr.mxu1 %v7791_v1  ;;  %v7513_v29 = vsub.f32 %v4140_v18, %v7507_v45 }
 0x290   :  { %5850 = vmatprep.subr.mxu0 %v7791_v1  ;;  %5852 = vmatprep.mubr.msk.f32.mxu0 %vm6060_vm2, %v7791_v1 }
 0x291   :  { %5851 = vmatpush3.msra.mxu0 %v7798_v57  ;;  %5884 = vmatpush3.msra.mxu1 %v7794_v8  ;;  %v7515_v8 = vand.u32 4294901760, %v4139_v49  ;;  %v4250_v26 = vand.u32 4294901760, %v7513_v29  ;;  %v7526_v57 = vand.u32 4294901760, %v4138_v40 }
 0x292   :  { %5885 = vmatprep.mubr.msk.f32.mxu1 %vm6060_vm2, %v7791_v1  ;;  %5853 = vmatmul.mubr.f32.vlgmr.msra.gmra.mxu0 %v3220_v17 }
 0x293   :  { %5866 = vmatprep.subr.mxu0 %v7791_v1  ;;  %5886 = vmatmul.mubr.f32.vlgmr.msra.gmra.mxu1 %v3219_v7  ;;  %v7524_v60 = vsub.f32 %v4139_v49, %v7515_v8 }
 0x294   :  { %5867 = vmatpush3.msra.mxu0 %v7799_v2  ;;  %5874 = vmatprep.mubr.msk.f32.mxu0 %vm6060_vm2, %v7791_v1  ;;  %v4137_v2 = vld [vmem:[%s7658_s13] sm:$0xff] }
 0x295   :  { %5868 = vmatprep.subr.mxu0 %v7791_v1  ;;  %5899 = vmatprep.subr.mxu1 %v7791_v1  ;;  %v7540_v63 = vand.u32 4294901760, %v4137_v2 }
 0x296   :  { %5869 = vmatpush3.msra.mxu0 %v7800_v47  ;;  %5907 = vmatprep.mubr.msk.f32.mxu1 %vm6060_vm2, %v7791_v1  ;;  %v4251_v47 = vsub.f32 %v7513_v29, %v4250_v26 }
 0x297   :  { %5870 = vmatprep.subr.mxu0 %v7791_v1  ;;  %5900 = vmatpush3.msra.mxu1 %v3758_v37 }
 0x298   :  { %5871 = vmatpush3.msra.mxu0 %v7801_v23  ;;  %5901 = vmatprep.subr.mxu1 %v7791_v1  ;;  %v4257_v23 = vand.u32 4294901760, %v7524_v60 }
 0x299   :  { %5872 = vmatprep.subr.mxu0 %v7791_v1  ;;  %5902 = vmatpush3.msra.mxu1 %v3765_v6 }
 0x29a   :  { %5873 = vmatpush3.msra.mxu0 %v7802_v31  ;;  %5903 = vmatprep.subr.mxu1 %v7791_v1  ;;  %v7538_v31 = vsub.f32 %v4138_v40, %v7526_v57  ;;  %v4258_v54 = vsub.f32 %v7524_v60, %v4257_v23 }
 0x29b   :  { %5875 = vmatmul.mubr.f32.vlgmr.msra.gmra.mxu0 %v3219_v7  ;;  %5888 = vmatprep.subr.mxu0 %v7791_v1 }
 0x29c   :  { %5896 = vmatprep.mubr.msk.f32.mxu0 %vm6060_vm2, %v7791_v1  ;;  %5889 = vmatpush3.msra.mxu0 %v7395_v50  ;;  %v4259_v44 = vand.u32 4294901760, %v4258_v54 }
 0x29d   :  { %5890 = vmatprep.subr.mxu0 %v7791_v1  ;;  %5904 = vmatpush3.msra.mxu1 %v3772_v21 }
 0x29e   :  { %5891 = vmatpush3.msra.mxu0 %v7403_v33  ;;  %5905 = vmatprep.subr.mxu1 %v7791_v1 }
 0x29f   :  { %5892 = vmatprep.subr.mxu0 %v7791_v1  ;;  %5906 = vmatpush3.msra.mxu1 %v3779_v38 }
 0x2a0   :  { %5893 = vmatpush3.msra.mxu0 %v7414_v42  ;;  %5921 = vmatprep.subr.mxu1 %v7791_v1 }
 0x2a1   :  { %5894 = vmatprep.subr.mxu0 %v7791_v1 }
 0x2a2   :  { %5895 = vmatpush3.msra.mxu0 %v7428_v3 }
 0x2a3   :  { %5910 = vmatprep.subr.mxu0 %v7791_v1 }
 0x341   :  { %v3316_v52 = vpop.f32.mrf.mxu1 }
 0x343   :  { %v5843_v11 = vpop.f32.mrf.mxu1 }
 0x349   :  { %v3473_v53 = vpop.f32.mrf.mxu1 }
 0x34a   :  { %v3225_v22 = vpop.f32.mrf.mxu0 }
 0x34b   :  { %v5865_v61 = vpop.f32.mrf.mxu1  ;;  %v3226_v12 = vadd.f32 %v5105_v46, %v3225_v22 }
 0x34c   :  { %v5832_v51 = vpop.f32.mrf.mxu0 }
 0x34d   :  { %v3317_v43 = vadd.f32 %v3316_v52, %v3226_v12  ;;  %v4136_v12 = vld [vmem:[%s7660_s12] sm:$0xf] }
 0x352   :  { %v3396_v15 = vpop.f32.mrf.mxu0 }
 0x353   :  { %v3631_v62 = vpop.f32.mrf.mxu1  ;;  %v3397_v34 = vadd.f32 %v3396_v15, %v3317_v43  ;;  %v4630_v43 = vsel %vm69_vm0, %v4136_v12, 0 }
 0x354   :  { %v5854_v20 = vpop.f32.mrf.mxu0 }
 0x355   :  { %v5887_v5 = vpop.f32.mrf.mxu1  ;;  %v3474_v59 = vadd.f32 %v3473_v53, %v3397_v34 }
 0x356   :  { %v4663_v5 = vand.u32 4294901760, %v4630_v43 }
 0x35b   :  { %v3556_v39 = vpop.f32.mrf.mxu0 }
 0x35c   :  { %v3557_v56 = vadd.f32 %v3556_v39, %v3474_v59  ;;  %v4740_v39 = vsub.f32 %v4630_v43, %v4663_v5 }
 0x35d   :  { %v5876_v14 = vpop.f32.mrf.mxu0 }
 0x35e   :  { %v3632_v9 = vadd.f32 %v3631_v62, %v3557_v56  ;;  %v4741_v14 = vand.u32 4294901760, %v4740_v39 }
 0x360   :  { %v3635_v24 = vmax.f32 %v3632_v9, 0.0  ;;  %v4742_v9 = vsub.f32 %v4740_v39, %v4741_v14 }
 0x362   :  { %v3648_v28 = vsel %vm54_vm3, %v3635_v24, 0  ;;  %v4743_v24 = vand.u32 4294901760, %v4742_v9 }
 0x363   :  { %v3719_v0 = vand.u32 4294901760, %v3648_v28 }
 0x365   :  { %v3720_v7 = vsub.f32 %v3648_v28, %v3719_v0  ;;  %5908 = vmatmul.mubr.f32.vlgmr.msra.gmra.mxu1 %v3719_v0  ;;  %v7803_v28 = vld [vmem:[#allocation3_spill] sm:$0xff] }
 0x366   :  { %5922 = vmatpush3.msra.mxu1 %v7395_v50  ;;  %5929 = vmatprep.mubr.msk.f32.mxu1 %vm6060_vm2, %v7791_v1 }
 0x367   :  { %5923 = vmatprep.subr.mxu1 %v7791_v1  ;;  %v3721_v17 = vand.u32 4294901760, %v3720_v7 }
 0x368   :  { %5924 = vmatpush3.msra.mxu1 %v7403_v33 }
 0x369   :  { %5925 = vmatprep.subr.mxu1 %v7791_v1  ;;  %v3722_v27 = vsub.f32 %v3720_v7, %v3721_v17 }
 0x36a   :  { %5926 = vmatpush3.msra.mxu1 %v7414_v42 }
 0x36b   :  { %5927 = vmatprep.subr.mxu1 %v7791_v1  ;;  %v3723_v10 = vand.u32 4294901760, %v3722_v27 }
 0x36c   :  { %5928 = vmatpush3.msra.mxu1 %v7428_v3 }
 0x36d   :  { %5930 = vmatmul.mubr.f32.vlgmr.msra.gmra.mxu1 %v3721_v17  ;;  %5943 = vmatprep.subr.mxu1 %v7791_v1  ;;  %v7806_v17 = vld [vmem:[#allocation4_spill] sm:$0xff] }
 0x36e   :  { %5897 = vmatmul.mubr.f32.vlgmr.msra.gmra.mxu0 %v3723_v10  ;;  %5944 = vmatpush3.msra.mxu1 %v7395_v50  ;;  %v4252_v50 = vand.u32 4294901760, %v4251_v47 }
 0x36f   :  { %5911 = vmatpush3.msra.mxu0 %v7401_v30  ;;  %5945 = vmatprep.subr.mxu1 %v7791_v1  ;;  %v4264_v30 = vand.u32 4294901760, %v7538_v31 }
 0x370   :  { %5912 = vmatprep.subr.mxu0 %v7791_v1  ;;  %5946 = vmatpush3.msra.mxu1 %v7403_v33  ;;  %v7549_v33 = vsub.f32 %v4137_v2, %v7540_v63 }
 0x371   :  { %5913 = vmatpush3.msra.mxu0 %v7412_v19  ;;  %5947 = vmatprep.subr.mxu1 %v7791_v1 }
 0x372   :  { %5914 = vmatprep.subr.mxu0 %v7791_v1  ;;  %5948 = vmatpush3.msra.mxu1 %v7414_v42  ;;  %v4271_v19 = vand.u32 4294901760, %v7549_v33 }
 0x373   :  { %5915 = vmatpush3.msra.mxu0 %v7426_v55  ;;  %5949 = vmatprep.subr.mxu1 %v7791_v1 }
 0x374   :  { %5916 = vmatprep.subr.mxu0 %v7791_v1  ;;  %5918 = vmatprep.mubr.msk.f32.mxu0 %vm6060_vm2, %v7791_v1  ;;  %v4272_v25 = vsub.f32 %v7549_v33, %v4271_v19 }
 0x375   :  { %5917 = vmatpush3.msra.mxu0 %v7437_v36  ;;  %5950 = vmatpush3.msra.mxu1 %v7428_v3  ;;  %v5106_v36 = vld [vmem:[%s7659_s11] ss:$0 sm:$0xff] }
 0x376   :  { %5951 = vmatprep.mubr.msk.f32.mxu1 %vm6060_vm2, %v7791_v1  ;;  %5919 = vmatmul.mubr.f32.vlgmr.msra.gmra.mxu0 %v3720_v7  ;;  %v4273_v4 = vand.u32 4294901760, %v4272_v25  ;;  %v7805_v7 = vld [vmem:[#allocation6_spill] sm:$0xff] }
 0x377   :  { %5932 = vmatprep.subr.mxu0 %v7791_v1  ;;  %5952 = vmatmul.mubr.f32.vlgmr.msra.gmra.mxu1 %v3719_v0 }
 0x378   :  { %5933 = vmatpush3.msra.mxu0 %v3756_v48  ;;  %5940 = vmatprep.mubr.msk.f32.mxu0 %vm6060_vm2, %v7791_v1  ;;  %v4265_v48 = vsub.f32 %v7538_v31, %v4264_v30 }
 0x379   :  { %5934 = vmatprep.subr.mxu0 %v7791_v1  ;;  %5965 = vmatprep.subr.mxu1 %v7791_v1 }
 0x37a   :  { %5935 = vmatpush3.msra.mxu0 %v3763_v32  ;;  %5973 = vmatprep.mubr.msk.f32.mxu1 %vm6060_vm2, %v7791_v1  ;;  %v4266_v42 = vand.u32 4294901760, %v4265_v48 }
 0x37b   :  { %5936 = vmatprep.subr.mxu0 %v7791_v1  ;;  %5966 = vmatpush3.msra.mxu1 %v4252_v50 }
 0x37c   :  { %5937 = vmatpush3.msra.mxu0 %v3770_v58  ;;  %5967 = vmatprep.subr.mxu1 %v7791_v1 }
 0x37d   :  { %5938 = vmatprep.subr.mxu0 %v7791_v1  ;;  %5968 = vmatpush3.msra.mxu1 %v4259_v44 }
 0x37e   :  { %5939 = vmatpush3.msra.mxu0 %v3777_v16  ;;  %5969 = vmatprep.subr.mxu1 %v7791_v1 }
 0x37f   :  { %5941 = vmatmul.mubr.f32.vlgmr.msra.gmra.mxu0 %v3719_v0  ;;  %5954 = vmatprep.subr.mxu0 %v7791_v1  ;;  %v7804_v0 = vld [vmem:[#allocation5_spill] sm:$0xff] }
 0x380   :  { %5962 = vmatprep.mubr.msk.f32.mxu0 %vm6060_vm2, %v7791_v1  ;;  %5955 = vmatpush3.msra.mxu0 %v7507_v45 }
 0x381   :  { %5956 = vmatprep.subr.mxu0 %v7791_v1  ;;  %5970 = vmatpush3.msra.mxu1 %v4266_v42 }
 0x382   :  { %5957 = vmatpush3.msra.mxu0 %v7515_v8  ;;  %5971 = vmatprep.subr.mxu1 %v7791_v1 }
 0x383   :  { %5958 = vmatprep.subr.mxu0 %v7791_v1  ;;  %5972 = vmatpush3.msra.mxu1 %v4273_v4 }
 0x384   :  { %5959 = vmatpush3.msra.mxu0 %v7526_v57  ;;  %5987 = vmatprep.subr.mxu1 %v7791_v1 }
 0x385   :  { %5960 = vmatprep.subr.mxu0 %v7791_v1 }
 0x386   :  { %5961 = vmatpush3.msra.mxu0 %v7540_v63 }
 0x387   :  { %5976 = vmatprep.subr.mxu0 %v7791_v1 }
 0x425   :  { %v3816_v32 = vpop.f32.mrf.mxu1 }
 0x427   :  { %v5909_v55 = vpop.f32.mrf.mxu1 }
 0x42d   :  { %v3973_v3 = vpop.f32.mrf.mxu1 }
 0x42e   :  { %v3725_v37 = vpop.f32.mrf.mxu0 }
 0x42f   :  { %v5931_v35 = vpop.f32.mrf.mxu1  ;;  %v3726_v6 = vadd.f32 %v5106_v36, %v3725_v37 }
 0x430   :  { %v5898_v58 = vpop.f32.mrf.mxu0 }
 0x431   :  { %v3817_v21 = vadd.f32 %v3816_v32, %v3726_v6  ;;  %v5107_v6 = vld [vmem:[%s7661_s14] ss:$0 sm:$0xff] }
 0x436   :  { %v3896_v13 = vpop.f32.mrf.mxu0 }
 0x437   :  { %v4131_v16 = vpop.f32.mrf.mxu1  ;;  %v3897_v52 = vadd.f32 %v3896_v13, %v3817_v21 }
 0x438   :  { %v5920_v41 = vpop.f32.mrf.mxu0 }
 0x439   :  { %v5953_v38 = vpop.f32.mrf.mxu1  ;;  %v3974_v11 = vadd.f32 %v3973_v3, %v3897_v52 }
 0x43f   :  { %v4056_v53 = vpop.f32.mrf.mxu0 }
 0x440   :  { %v4057_v22 = vadd.f32 %v4056_v53, %v3974_v11 }
 0x441   :  { %v5942_v61 = vpop.f32.mrf.mxu0 }
 0x442   :  { %v4132_v51 = vadd.f32 %v4131_v16, %v4057_v22 }
 0x444   :  { %v4135_v46 = vmax.f32 %v4132_v51, 0.0 }
 0x446   :  { %v4142_v15 = vsel %vm54_vm3, %v4135_v46, 0 }
 0x447   :  { %v4213_v62 = vand.u32 4294901760, %v4142_v15 }
 0x449   :  { %v4214_v20 = vsub.f32 %v4142_v15, %v4213_v62  ;;  %5974 = vmatmul.mubr.f32.vlgmr.msra.gmra.mxu1 %v4213_v62 }
 0x44a   :  { %5988 = vmatpush3.msra.mxu1 %v7507_v45  ;;  %5995 = vmatprep.mubr.msk.f32.mxu1 %vm6060_vm2, %v7791_v1 }
 0x44b   :  { %v4215_v34 = vand.u32 4294901760, %v4214_v20  ;;  %5989 = vmatprep.subr.mxu1 %v7791_v1 }
 0x44c   :  { %5990 = vmatpush3.msra.mxu1 %v7515_v8 }
 0x44d   :  { %v4216_v59 = vsub.f32 %v4214_v20, %v4215_v34  ;;  %5991 = vmatprep.subr.mxu1 %v7791_v1 }
 0x44e   :  { %5992 = vmatpush3.msra.mxu1 %v7526_v57 }
 0x44f   :  { %v4217_v56 = vand.u32 4294901760, %v4216_v59  ;;  %5993 = vmatprep.subr.mxu1 %v7791_v1 }
 0x450   :  { %5994 = vmatpush3.msra.mxu1 %v7540_v63 }
 0x451   :  { %5996 = vmatmul.mubr.f32.vlgmr.msra.gmra.mxu1 %v4215_v34  ;;  %6009 = vmatprep.subr.mxu1 %v7791_v1 }
 0x452   :  { %5963 = vmatmul.mubr.f32.vlgmr.msra.gmra.mxu0 %v4217_v56  ;;  %6010 = vmatpush3.msra.mxu1 %v7507_v45 }
 0x453   :  { %5977 = vmatpush3.msra.mxu0 %v7513_v29  ;;  %6011 = vmatprep.subr.mxu1 %v7791_v1 }
 0x454   :  { %5978 = vmatprep.subr.mxu0 %v7791_v1  ;;  %6012 = vmatpush3.msra.mxu1 %v7515_v8 }
 0x455   :  { %5979 = vmatpush3.msra.mxu0 %v7524_v60  ;;  %6013 = vmatprep.subr.mxu1 %v7791_v1 }
 0x456   :  { %5980 = vmatprep.subr.mxu0 %v7791_v1  ;;  %6014 = vmatpush3.msra.mxu1 %v7526_v57 }
 0x457   :  { %5981 = vmatpush3.msra.mxu0 %v7538_v31  ;;  %6015 = vmatprep.subr.mxu1 %v7791_v1 }
 0x458   :  { %5982 = vmatprep.subr.mxu0 %v7791_v1  ;;  %5984 = vmatprep.mubr.msk.f32.mxu0 %vm6060_vm2, %v7791_v1 }
 0x459   :  { %5983 = vmatpush3.msra.mxu0 %v7549_v33  ;;  %6016 = vmatpush3.msra.mxu1 %v7540_v63 }
 0x45a   :  { %6017 = vmatprep.mubr.msk.f32.mxu1 %vm6060_vm2, %v7791_v1  ;;  %5985 = vmatmul.mubr.f32.vlgmr.msra.gmra.mxu0 %v4214_v20 }
 0x45b   :  { %5998 = vmatprep.subr.mxu0 %v7791_v1  ;;  %6018 = vmatmul.mubr.f32.vlgmr.msra.gmra.mxu1 %v4213_v62 }
 0x45c   :  { %5999 = vmatpush3.msra.mxu0 %v4250_v26  ;;  %6006 = vmatprep.mubr.msk.f32.mxu0 %vm6060_vm2, %v7791_v1 }
 0x45d   :  { %6000 = vmatprep.subr.mxu0 %v7791_v1  ;;  %6025 = vmatprep.subr.mxu1 %v7791_v1 }
 0x45e   :  { %6001 = vmatpush3.msra.mxu0 %v4257_v23  ;;  %6026 = vmatpush3.msra.mxu1 %v4743_v24 }
 0x45f   :  { %6002 = vmatprep.subr.mxu0 %v7791_v1  ;;  %6027 = vmatprep.mubr.msk.f32.mxu1 %vm6060_vm2, %v7791_v1 }
 0x460   :  { %6003 = vmatpush3.msra.mxu0 %v4264_v30  ;;  %6028 = vmatmul.mubr.f32.vlgmr.msra.gmra.mxu1 %v7803_v28 }
 0x461   :  { %6004 = vmatprep.subr.mxu0 %v7791_v1  ;;  %6035 = vmatprep.subr.mxu1 %v7791_v1 }
 0x462   :  { %6005 = vmatpush3.msra.mxu0 %v4271_v19  ;;  %6036 = vmatpush3.msra.mxu1 %v4663_v5 }
 0x463   :  { %6007 = vmatmul.mubr.f32.vlgmr.msra.gmra.mxu0 %v4213_v62  ;;  %6020 = vmatprep.subr.mxu0 %v7791_v1 }
 0x464   :  { %6021 = vmatpush3.msra.mxu0 %v4663_v5  ;;  %6022 = vmatprep.mubr.msk.f32.mxu0 %vm6060_vm2, %v7791_v1 }
 0x465   :  { %6030 = vmatprep.subr.mxu0 %v7791_v1  ;;  %6037 = vmatprep.mubr.msk.f32.mxu1 %vm6060_vm2, %v7791_v1 }
 0x466   :  { %6038 = vmatmul.mubr.f32.vlgmr.msra.gmra.mxu1 %v7804_v0  ;;  %6045 = vmatprep.subr.mxu1 %v7791_v1 }
 0x467   :  { %6023 = vmatmul.mubr.f32.vlgmr.msra.gmra.mxu0 %v7805_v7  ;;  %6046 = vmatpush3.msra.mxu1 %v4663_v5 }
 0x468   :  { %6031 = vmatpush3.msra.mxu0 %v4740_v39  ;;  %6032 = vmatprep.mubr.msk.f32.mxu0 %vm6060_vm2, %v7791_v1 }
 0x469   :  { %6040 = vmatprep.subr.mxu0 %v7791_v1  ;;  %6047 = vmatprep.mubr.msk.f32.mxu1 %vm6060_vm2, %v7791_v1 }
 0x46a   :  { %6048 = vmatmul.mubr.f32.vlgmr.msra.gmra.mxu1 %v7803_v28 }
 0x46b   :  { %6033 = vmatmul.mubr.f32.vlgmr.msra.gmra.mxu0 %v7806_v17 }
 0x46c   :  { %6041 = vmatpush3.msra.mxu0 %v4741_v14  ;;  %6042 = vmatprep.mubr.msk.f32.mxu0 %vm6060_vm2, %v7791_v1 }
 0x46f   :  { %6043 = vmatmul.mubr.f32.vlgmr.msra.gmra.mxu0 %v7803_v28 }
 0x509   :  { %v4310_v27 = vpop.f32.mrf.mxu1 }
 0x50b   :  { %v5975_v10 = vpop.f32.mrf.mxu1 }
 0x511   :  { %v4467_v18 = vpop.f32.mrf.mxu1 }
 0x512   :  { %v4219_v45 = vpop.f32.mrf.mxu0 }
 0x513   :  { %v5997_v49 = vpop.f32.mrf.mxu1  ;;  %v4311_v26 = vadd.f32 %v4310_v27, %v4219_v45 }
 0x514   :  { %v5964_v29 = vpop.f32.mrf.mxu0 }
 0x51a   :  { %v4390_v8 = vpop.f32.mrf.mxu0 }
 0x51b   :  { %v4625_v40 = vpop.f32.mrf.mxu1  ;;  %v4391_v2 = vadd.f32 %v4390_v8, %v4311_v26 }
 0x51c   :  { %v5986_v60 = vpop.f32.mrf.mxu0 }
 0x51d   :  { %v6019_v57 = vpop.f32.mrf.mxu1  ;;  %v4468_v23 = vadd.f32 %v4467_v18, %v4391_v2 }
 0x520   :  { %v4780_v47 = vpop.f32.mrf.mxu1 }
 0x522   :  { %v6029_v31 = vpop.f32.mrf.mxu1 }
 0x523   :  { %v4550_v63 = vpop.f32.mrf.mxu0 }
 0x524   :  { %v4551_v50 = vadd.f32 %v4550_v63, %v4468_v23 }
 0x525   :  { %v6008_v1 = vpop.f32.mrf.mxu0 }
 0x526   :  { %v4626_v54 = vadd.f32 %v4625_v40, %v4551_v50  ;;  %v4928_v30 = vpop.f32.mrf.mxu1 }
 0x527   :  { %v4704_v33 = vpop.f32.mrf.mxu0 }
 0x528   :  { %v4705_v44 = vadd.f32 %v4704_v33, %v4626_v54  ;;  %v6039_v48 = vpop.f32.mrf.mxu1 }
 0x529   :  { %v6024_v19 = vpop.f32.mrf.mxu0 }
 0x52a   :  { %v4781_v42 = vadd.f32 %v4780_v47, %v4705_v44  ;;  %v5074_v25 = vpop.f32.mrf.mxu1 }
 0x52b   :  { %v4854_v4 = vpop.f32.mrf.mxu0 }
 0x52c   :  { %v4855_v32 = vadd.f32 %v4854_v4, %v4781_v42  ;;  %v6049_v55 = vpop.f32.mrf.mxu1 }
 0x52d   :  { %v6034_v3 = vpop.f32.mrf.mxu0 }
 0x52e   :  { %v4929_v37 = vadd.f32 %v4928_v30, %v4855_v32 }
 0x52f   :  { %v5002_v35 = vpop.f32.mrf.mxu0 }
 0x530   :  { %v5003_v58 = vadd.f32 %v5002_v35, %v4929_v37 }
 0x531   :  { %v6044_v36 = vpop.f32.mrf.mxu0 }
 0x532   :  { %v5075_v13 = vadd.f32 %v5074_v25, %v5003_v58 }
 0x534   :  { %v5085_v16 = vadd.f32 %v5107_v6, %v5075_v13 }
 0x536   :  { %v5086_v21 = vsel %vm65_vm1, %v5085_v16, -inf }
 0x537   :  { %5087 = vmax.xlane.f32.xlu1 %v5086_v21 }
 0x5c0   :  { %v5088_v41 = vpop.xlane.xlu1 %5087 }
 0x5c1   :  { %v5089_v38 = vsub.f32 %v5085_v16, %v5088_v41 }
 0x5c3   :  { %v5090_v52 = vmul.f32 1.442695, %v5089_v38 }
 0x5c5   :  { %6055 = vpow2.f32 %v5090_v52 }
 0x5d2   :  { %v6056_v11 = vpop.eup %6055 }
 0x5d3   :  { %v5092_v53 = vsel %vm65_vm1, %v6056_v11, 0.0 }
 0x5d4   :  { %5093 = vadd.xlane.f32.xlu1 %v5092_v53 }
 0x65d   :  { %v5094_v22 = vpop.xlane.xlu1 %5093 }
 0x65e   :  { %6057 = vlog2.f32 %v5094_v22 }
 0x66b   :  { %v6058_v61 = vpop.eup %6057 }
 0x66c   :  { %v5096_v51 = vmul.f32 0.6931472, %v6058_v61 }
 0x66e   :  { %v5097_v46 = vsub.f32 %v5089_v38, %v5096_v51 }
 0x670   :  { %5098 = vst.msk [vmem:[%s7662_s15] sm:$0xff] %vm65_vm1, %v5097_v46 }

</bundles_post_ra>
